<compile_context>
chip_gen: v5e
topology: v5e:2x2
jax: 0.10.0
libtpu: 0.0.40
codegen_flags: <defaults>
</compile_context>

<pallas_src>
import functools

import jax
import jax.numpy as jnp
import numpy as np
from jax.experimental import pallas as pl
from jax.experimental.pallas import tpu as pltpu

_VMEM = pl.BlockSpec(memory_space=pltpu.MemorySpace.VMEM)
_SUBLANE = 8


# ---------------------------------------------------------------------------
# Fused Pallas kernel: [LSTM -> ReLU -> Dropout(0)]*n -> flatten -> FC head
# ---------------------------------------------------------------------------
def fused_lstm_fc_kernel(*refs, seq_len, batch, batch_pad, hidden_sizes, fc_sizes):
    """refs = [x_tm, (wih_t, whh_t, bias)*n_lstm, (w_t, b)*n_fc, out].

    x_tm:  (T*BP, F)   time-major input, batch padded to BP (=8) sublanes,
                       row t*BP + b  (padded rows are zeros and are discarded)
    wih_t: (in, 4H)    transposed W_ih, gate columns permuted to [i, f, o, g]
    whh_t: (H, 4H)     transposed W_hh, same gate permutation
    bias:  (1, 4H)     b_ih + b_hh, same gate permutation
    w_t:   (in, out)   transposed FC weight (flatten layout for FC1)
    b:     (1, out)    FC bias
    out:   (B, fc_sizes[-1])
    """
    n_lstm = len(hidden_sizes)
    n_fc = len(fc_sizes)
    T, BP = seq_len, batch_pad
    f32 = jnp.float32

    x_ref = refs[0]
    lstm_refs = [tuple(refs[1 + 3 * i: 4 + 3 * i]) for i in range(n_lstm)]
    fc_base = 1 + 3 * n_lstm
    fc_refs = [tuple(refs[fc_base + 2 * i: fc_base + 2 * i + 2]) for i in range(n_fc)]
    out_ref = refs[fc_base + 2 * n_fc]

    # Small weights: load once, stay resident.
    wih = [r[...] for (r, _, _) in lstm_refs]
    whh = [r[...] for (_, r, _) in lstm_refs]
    bias = [r[...] for (_, _, r) in lstm_refs]

    H_last = hidden_sizes[-1]
    fc0 = fc_sizes[0]
    w_fc0_ref, b_fc0_ref = fc_refs[0]

    # Layer-0 input projection hoisted out of the recurrence:
    # one (T*BP, F) x (F, 4H0) matmul for all T steps.
    proj0 = jnp.dot(x_ref[...], wih[0], preferred_element_type=f32) + bias[0]

    # Recurrent state carried as values (vregs) — nothing touches VMEM scratch
    # on the serial path.
    h = [jnp.zeros((BP, Hl), f32) for Hl in hidden_sizes]
    c = [jnp.zeros((BP, Hl), f32) for Hl in hidden_sizes]
    fc_acc = jnp.zeros((BP, fc0), f32)

    def cell(gates, c_prev, Hl):
        # gate columns pre-permuted to [i, f, o, g]:
        #   one sigmoid over the contiguous 3H block, one tanh over the rest.
        sig = jax.nn.sigmoid(gates[:, :3 * Hl])
        g_g = jnp.tanh(gates[:, 3 * Hl:4 * Hl])
        i_g = sig[:, 0 * Hl:1 * Hl]
        f_g = sig[:, 1 * Hl:2 * Hl]
        o_g = sig[:, 2 * Hl:3 * Hl]
        c_new = f_g * c_prev + i_g * g_g
        h_new = o_g * jnp.tanh(c_new)
        return h_new, c_new

    # Wavefront over time: each tick advances every layer by one step; layer l
    # at time t depends only on layer l-1 at time t, so the scheduler can
    # overlap layer l's step t with layer l-1's step t+1.
    for t in range(T):
        y = None
        for li in range(n_lstm):
            Hl = hidden_sizes[li]
            if li == 0:
                # BP == 8 -> sublane-aligned (full-vreg) slice, no relayout.
                inp = proj0[t * BP:(t + 1) * BP, :]
            else:
                # per-step input projection: independent of this layer's h-chain.
                inp = jnp.dot(y, wih[li], preferred_element_type=f32) + bias[li]
            gates = inp + jnp.dot(h[li], whh[li], preferred_element_type=f32)
            h[li], c[li] = cell(gates, c[li], Hl)
            y = jnp.maximum(h[li], 0.0)             # post-LSTM ReLU block
        # FC1 folded into the time loop (PyTorch flatten layout: row b is
        # [y_0, y_1, ...]): fc_acc += y_t @ W1_t[t*H:(t+1)*H, :].
        fc_acc = fc_acc + jnp.dot(
            y, w_fc0_ref[t * H_last:(t + 1) * H_last, :],
            preferred_element_type=f32)

    # TODO(synk): Dropout(p=0.0) and normalization_layer=None are identity at inference.

    # Remaining FC head: (ReLU -> Dropout(0) -> Linear) per non-final layer.
    z = fc_acc + b_fc0_ref[...]
    for fi in range(1, n_fc):
        z = jnp.maximum(z, 0.0)                     # no activation after last FC
        w_ref, b_ref = fc_refs[fi]
        z = jnp.dot(z, w_ref[...], preferred_element_type=f32) + b_ref[...]

    out_ref[...] = z[:batch, :].astype(out_ref.dtype)


# ---------------------------------------------------------------------------
# Wrapper
# ---------------------------------------------------------------------------
def build_forward(n_features, seq_len, batch, hidden_sizes, fc_sizes):
    hidden_sizes = tuple(int(h) for h in hidden_sizes)
    fc_sizes = tuple(int(f) for f in fc_sizes)
    batch_pad = max(_SUBLANE, ((batch + _SUBLANE - 1) // _SUBLANE) * _SUBLANE)
    n_in = 1 + 3 * len(hidden_sizes) + 2 * len(fc_sizes)

    kernel = functools.partial(
        fused_lstm_fc_kernel,
        seq_len=seq_len, batch=batch, batch_pad=batch_pad,
        hidden_sizes=hidden_sizes, fc_sizes=fc_sizes)

    call = pl.pallas_call(
        kernel,
        out_shape=jax.ShapeDtypeStruct((batch, fc_sizes[-1]), jnp.float32),
        in_specs=[_VMEM] * n_in,
        out_specs=_VMEM,
    )

    @jax.jit
    def forward(x, packed):
        # One-time layout plumbing outside the kernel: batch-first (B,T,F) ->
        # time-major (T, BP, F) with batch zero-padded to 8 sublanes, then
        # flattened to (T*BP, F).  Replaces the in-kernel scalar staging loop.
        xt = jnp.transpose(x.astype(jnp.float32), (1, 0, 2))          # (T, B, F)
        xt = jnp.pad(xt, ((0, 0), (0, batch_pad - batch), (0, 0)))    # (T, BP, F)
        x_tm = xt.reshape(seq_len * batch_pad, n_features)
        args = [x_tm]
        for p in packed["lstm"]:
            args += [p["wih_t"], p["whh_t"], p["bias"]]
        for p in packed["fc"]:
            args += [p["w_t"], p["b"]]
        return call(*args)

    return forward


# ---------------------------------------------------------------------------
# Parameters: raw (PyTorch layout) init + one-time packing for the kernel
# ---------------------------------------------------------------------------
def init_params(key, n_features, out_features, fc_outputs, seq_len):
    params = {"lstm": [], "fc": []}
    in_feat = n_features
    for H in out_features:
        k = 1.0 / np.sqrt(H)
        key, k1, k2, k3, k4 = jax.random.split(key, 5)
        params["lstm"].append(dict(
            w_ih=jax.random.uniform(k1, (4 * H, in_feat), jnp.float32, -k, k),
            w_hh=jax.random.uniform(k2, (4 * H, H), jnp.float32, -k, k),
            b_ih=jax.random.uniform(k3, (4 * H,), jnp.float32, -k, k),
            b_hh=jax.random.uniform(k4, (4 * H,), jnp.float32, -k, k),
        ))
        in_feat = H
    fc_in = out_features[-1] * seq_len
    for fc_out in fc_outputs:
        k = 1.0 / np.sqrt(fc_in)
        key, k1, k2 = jax.random.split(key, 3)
        params["fc"].append(dict(
            w=jax.random.uniform(k1, (fc_out, fc_in), jnp.float32, -k, k),
            b=jax.random.uniform(k2, (fc_out,), jnp.float32, -k, k),
        ))
        fc_in = fc_out
    return params


def _permute_ifgo_to_ifog(w, axis=0):
    """Reorder PyTorch gate blocks [i, f, g, o] -> [i, f, o, g] along `axis`."""
    i, f, g, o = jnp.split(w, 4, axis=axis)
    return jnp.concatenate([i, f, o, g], axis=axis)


def prepare_params(params):
    """One-time layout prep (off the forward hot path): fuse LSTM biases,
    permute gate blocks to [i, f, o, g], transpose all weights to (in, out)."""
    packed = {"lstm": [], "fc": []}
    for p in params["lstm"]:
        w_ih = _permute_ifgo_to_ifog(p["w_ih"], axis=0)
        w_hh = _permute_ifgo_to_ifog(p["w_hh"], axis=0)
        b = _permute_ifgo_to_ifog(p["b_ih"] + p["b_hh"], axis=0)
        packed["lstm"].append(dict(
            wih_t=jnp.transpose(w_ih).astype(jnp.float32),
            whh_t=jnp.transpose(w_hh).astype(jnp.float32),
            bias=b.reshape(1, -1).astype(jnp.float32),
        ))
    for p in params["fc"]:
        packed["fc"].append(dict(
            w_t=jnp.transpose(p["w"]).astype(jnp.float32),
            b=p["b"].reshape(1, -1).astype(jnp.float32),
        ))
    return packed


# ---------------------------------------------------------------------------
# Pure-JAX reference (correctness check) — uses the raw PyTorch-layout params
# ---------------------------------------------------------------------------
def _lstm_ref(x, w_ih, w_hh, b_ih, b_hh):
    B, T, F = x.shape
    H = w_hh.shape[1]

    def step(carry, x_t):
        h, c = carry
        gates = x_t @ w_ih.T + h @ w_hh.T + b_ih + b_hh
        i, f, g, o = jnp.split(gates, 4, axis=-1)
        i, f, o = jax.nn.sigmoid(i), jax.nn.sigmoid(f), jax.nn.sigmoid(o)
        g = jnp.tanh(g)
        c = f * c + i * g
        h = o * jnp.tanh(c)
        return (h, c), h

    (_, _), hs = jax.lax.scan(step, (jnp.zeros((B, H)), jnp.zeros((B, H))),
                              jnp.transpose(x, (1, 0, 2)))
    return jnp.transpose(hs, (1, 0, 2))


def _model_ref(batch, params):
    x = batch["X"]
    for p in params["lstm"]:
        x = jnp.maximum(_lstm_ref(x, p["w_ih"], p["w_hh"], p["b_ih"], p["b_hh"]), 0.0)
    x = x.reshape(x.shape[0], -1)
    fc1, fc2 = params["fc"]
    x = jnp.maximum(x @ fc1["w"].T + fc1["b"], 0.0)
    return x @ fc2["w"].T + fc2["b"]


# ---------------------------------------------------------------------------
if __name__ == "__main__":
    # config (mirrors the PyTorch module's expected config dict)
    n_features, seq_len, batch_size = 4, 8, 2
    out_features = [16, 32]
    fc_outputs = [16, 1]

    key = jax.random.PRNGKey(0)
    key, kx, kp = jax.random.split(key, 3)
    X = jax.random.normal(kx, (batch_size, seq_len, n_features), jnp.float32)
    params = init_params(kp, n_features, out_features, fc_outputs, seq_len)
    packed = jax.tree_util.tree_map(jax.block_until_ready, prepare_params(params))

    forward = build_forward(n_features, seq_len, batch_size, out_features, fc_outputs)

    batch = {"X": X}
    out = jax.block_until_ready(forward(batch["X"], packed))
    ref = jax.block_until_ready(_model_ref(batch, params))

    assert out.shape == (batch_size, fc_outputs[-1]), out.shape
    np.testing.assert_allclose(np.asarray(out), np.asarray(ref), rtol=1e-4, atol=1e-4)

    print("KERNEL_OK")
</pallas_src>

<mosaic_0001>
module attributes {stable_mosaic.version = 11 : i64} {
  func.func @fused_lstm_fc_kernel(%arg0: memref<64x4xf32, #tpu.memory_space<vmem>>, %arg1: memref<4x64xf32, #tpu.memory_space<vmem>>, %arg2: memref<16x64xf32, #tpu.memory_space<vmem>>, %arg3: memref<1x64xf32, #tpu.memory_space<vmem>>, %arg4: memref<16x128xf32, #tpu.memory_space<vmem>>, %arg5: memref<32x128xf32, #tpu.memory_space<vmem>>, %arg6: memref<1x128xf32, #tpu.memory_space<vmem>>, %arg7: memref<256x16xf32, #tpu.memory_space<vmem>>, %arg8: memref<1x16xf32, #tpu.memory_space<vmem>>, %arg9: memref<16x1xf32, #tpu.memory_space<vmem>>, %arg10: memref<1x1xf32, #tpu.memory_space<vmem>>, %arg11: memref<2x1xf32, #tpu.memory_space<vmem>>) attributes {dimension_semantics = [], scalar_prefetch = 0 : i64, scratch_operands = 0 : i64, tpu.core_type = #tpu.core_type<tc>} {
    %c0 = arith.constant 0 : index
    %c0_0 = arith.constant 0 : index
    %0 = vector.load %arg1[%c0, %c0_0] : memref<4x64xf32, #tpu.memory_space<vmem>>, vector<4x64xf32>
    %c0_1 = arith.constant 0 : index
    %c0_2 = arith.constant 0 : index
    %1 = vector.load %arg4[%c0_1, %c0_2] : memref<16x128xf32, #tpu.memory_space<vmem>>, vector<16x128xf32>
    %c0_3 = arith.constant 0 : index
    %c0_4 = arith.constant 0 : index
    %2 = vector.load %arg2[%c0_3, %c0_4] : memref<16x64xf32, #tpu.memory_space<vmem>>, vector<16x64xf32>
    %c0_5 = arith.constant 0 : index
    %c0_6 = arith.constant 0 : index
    %3 = vector.load %arg5[%c0_5, %c0_6] : memref<32x128xf32, #tpu.memory_space<vmem>>, vector<32x128xf32>
    %c0_7 = arith.constant 0 : index
    %c0_8 = arith.constant 0 : index
    %4 = vector.load %arg3[%c0_7, %c0_8] : memref<1x64xf32, #tpu.memory_space<vmem>>, vector<1x64xf32>
    %c0_9 = arith.constant 0 : index
    %c0_10 = arith.constant 0 : index
    %5 = vector.load %arg6[%c0_9, %c0_10] : memref<1x128xf32, #tpu.memory_space<vmem>>, vector<1x128xf32>
    %c0_11 = arith.constant 0 : index
    %c0_12 = arith.constant 0 : index
    %6 = vector.load %arg0[%c0_11, %c0_12] : memref<64x4xf32, #tpu.memory_space<vmem>>, vector<64x4xf32>
    %cst = arith.constant dense<0.000000e+00> : vector<64x64xf32>
    %7 = tpu.matmul %6, %0, %cst {dimension_numbers = #tpu.dot_dimension_numbers<[1], [0], [0], [1], [0, 0, 1, 1], [], []>} : vector<64x4xf32>, vector<4x64xf32>, vector<64x64xf32> -> vector<64x64xf32>
    %8 = vector.broadcast %4 : vector<1x64xf32> to vector<64x64xf32>
    %9 = arith.addf %7, %8 : vector<64x64xf32>
    %cst_13 = arith.constant 0.000000e+00 : f32
    %10 = vector.broadcast %cst_13 : f32 to vector<8x16xf32>
    %cst_14 = arith.constant 0.000000e+00 : f32
    %11 = vector.broadcast %cst_14 : f32 to vector<8x32xf32>
    %cst_15 = arith.constant 0.000000e+00 : f32
    %12 = vector.broadcast %cst_15 : f32 to vector<8x16xf32>
    %cst_16 = arith.constant 0.000000e+00 : f32
    %13 = vector.broadcast %cst_16 : f32 to vector<8x32xf32>
    %cst_17 = arith.constant 0.000000e+00 : f32
    %14 = vector.broadcast %cst_17 : f32 to vector<8x16xf32>
    %15 = vector.extract_strided_slice %9 {offsets = [0, 0], sizes = [8, 64], strides = [1, 1]} : vector<64x64xf32> to vector<8x64xf32>
    %cst_18 = arith.constant dense<0.000000e+00> : vector<8x64xf32>
    %16 = tpu.matmul %10, %2, %cst_18 {dimension_numbers = #tpu.dot_dimension_numbers<[1], [0], [0], [1], [0, 0, 1, 1], [], []>} : vector<8x16xf32>, vector<16x64xf32>, vector<8x64xf32> -> vector<8x64xf32>
    %17 = arith.addf %15, %16 : vector<8x64xf32>
    %18 = vector.extract_strided_slice %17 {offsets = [0, 0], sizes = [8, 48], strides = [1, 1]} : vector<8x64xf32> to vector<8x48xf32>
    %19 = arith.negf %18 : vector<8x48xf32>
    %20 = math.exp %19 : vector<8x48xf32>
    %cst_19 = arith.constant 1.000000e+00 : f32
    %21 = vector.broadcast %cst_19 : f32 to vector<8x48xf32>
    %22 = arith.addf %21, %20 : vector<8x48xf32>
    %23 = arith.divf %21, %22 : vector<8x48xf32>
    %24 = vector.extract_strided_slice %17 {offsets = [0, 48], sizes = [8, 16], strides = [1, 1]} : vector<8x64xf32> to vector<8x16xf32>
    %25 = math.tanh %24 : vector<8x16xf32>
    %26 = vector.extract_strided_slice %23 {offsets = [0, 0], sizes = [8, 16], strides = [1, 1]} : vector<8x48xf32> to vector<8x16xf32>
    %27 = vector.extract_strided_slice %23 {offsets = [0, 16], sizes = [8, 16], strides = [1, 1]} : vector<8x48xf32> to vector<8x16xf32>
    %28 = vector.extract_strided_slice %23 {offsets = [0, 32], sizes = [8, 16], strides = [1, 1]} : vector<8x48xf32> to vector<8x16xf32>
    %29 = arith.mulf %27, %12 : vector<8x16xf32>
    %30 = arith.mulf %26, %25 : vector<8x16xf32>
    %31 = arith.addf %29, %30 : vector<8x16xf32>
    %32 = math.tanh %31 : vector<8x16xf32>
    %33 = arith.mulf %28, %32 : vector<8x16xf32>
    %cst_20 = arith.constant 0.000000e+00 : f32
    %34 = vector.broadcast %cst_20 : f32 to vector<8x16xf32>
    %35 = arith.maximumf %33, %34 : vector<8x16xf32>
    %cst_21 = arith.constant dense<0.000000e+00> : vector<8x128xf32>
    %36 = tpu.matmul %35, %1, %cst_21 {dimension_numbers = #tpu.dot_dimension_numbers<[1], [0], [0], [1], [0, 0, 1, 1], [], []>} : vector<8x16xf32>, vector<16x128xf32>, vector<8x128xf32> -> vector<8x128xf32>
    %37 = vector.broadcast %5 : vector<1x128xf32> to vector<8x128xf32>
    %38 = arith.addf %36, %37 : vector<8x128xf32>
    %cst_22 = arith.constant dense<0.000000e+00> : vector<8x128xf32>
    %39 = tpu.matmul %11, %3, %cst_22 {dimension_numbers = #tpu.dot_dimension_numbers<[1], [0], [0], [1], [0, 0, 1, 1], [], []>} : vector<8x32xf32>, vector<32x128xf32>, vector<8x128xf32> -> vector<8x128xf32>
    %40 = arith.addf %38, %39 : vector<8x128xf32>
    %41 = vector.extract_strided_slice %40 {offsets = [0, 0], sizes = [8, 96], strides = [1, 1]} : vector<8x128xf32> to vector<8x96xf32>
    %42 = arith.negf %41 : vector<8x96xf32>
    %43 = math.exp %42 : vector<8x96xf32>
    %cst_23 = arith.constant 1.000000e+00 : f32
    %44 = vector.broadcast %cst_23 : f32 to vector<8x96xf32>
    %45 = arith.addf %44, %43 : vector<8x96xf32>
    %46 = arith.divf %44, %45 : vector<8x96xf32>
    %47 = vector.extract_strided_slice %40 {offsets = [0, 96], sizes = [8, 32], strides = [1, 1]} : vector<8x128xf32> to vector<8x32xf32>
    %48 = math.tanh %47 : vector<8x32xf32>
    %49 = vector.extract_strided_slice %46 {offsets = [0, 0], sizes = [8, 32], strides = [1, 1]} : vector<8x96xf32> to vector<8x32xf32>
    %50 = vector.extract_strided_slice %46 {offsets = [0, 32], sizes = [8, 32], strides = [1, 1]} : vector<8x96xf32> to vector<8x32xf32>
    %51 = vector.extract_strided_slice %46 {offsets = [0, 64], sizes = [8, 32], strides = [1, 1]} : vector<8x96xf32> to vector<8x32xf32>
    %52 = arith.mulf %50, %13 : vector<8x32xf32>
    %53 = arith.mulf %49, %48 : vector<8x32xf32>
    %54 = arith.addf %52, %53 : vector<8x32xf32>
    %55 = math.tanh %54 : vector<8x32xf32>
    %56 = arith.mulf %51, %55 : vector<8x32xf32>
    %cst_24 = arith.constant 0.000000e+00 : f32
    %57 = vector.broadcast %cst_24 : f32 to vector<8x32xf32>
    %58 = arith.maximumf %56, %57 : vector<8x32xf32>
    %c0_25 = arith.constant 0 : index
    %c0_26 = arith.constant 0 : index
    %59 = vector.load %arg7[%c0_25, %c0_26] : memref<256x16xf32, #tpu.memory_space<vmem>>, vector<32x16xf32>
    %cst_27 = arith.constant dense<0.000000e+00> : vector<8x16xf32>
    %60 = tpu.matmul %58, %59, %cst_27 {dimension_numbers = #tpu.dot_dimension_numbers<[1], [0], [0], [1], [0, 0, 1, 1], [], []>} : vector<8x32xf32>, vector<32x16xf32>, vector<8x16xf32> -> vector<8x16xf32>
    %61 = arith.addf %14, %60 : vector<8x16xf32>
    %62 = vector.extract_strided_slice %9 {offsets = [8, 0], sizes = [8, 64], strides = [1, 1]} : vector<64x64xf32> to vector<8x64xf32>
    %cst_28 = arith.constant dense<0.000000e+00> : vector<8x64xf32>
    %63 = tpu.matmul %33, %2, %cst_28 {dimension_numbers = #tpu.dot_dimension_numbers<[1], [0], [0], [1], [0, 0, 1, 1], [], []>} : vector<8x16xf32>, vector<16x64xf32>, vector<8x64xf32> -> vector<8x64xf32>
    %64 = arith.addf %62, %63 : vector<8x64xf32>
    %65 = vector.extract_strided_slice %64 {offsets = [0, 0], sizes = [8, 48], strides = [1, 1]} : vector<8x64xf32> to vector<8x48xf32>
    %66 = arith.negf %65 : vector<8x48xf32>
    %67 = math.exp %66 : vector<8x48xf32>
    %cst_29 = arith.constant 1.000000e+00 : f32
    %68 = vector.broadcast %cst_29 : f32 to vector<8x48xf32>
    %69 = arith.addf %68, %67 : vector<8x48xf32>
    %70 = arith.divf %68, %69 : vector<8x48xf32>
    %71 = vector.extract_strided_slice %64 {offsets = [0, 48], sizes = [8, 16], strides = [1, 1]} : vector<8x64xf32> to vector<8x16xf32>
    %72 = math.tanh %71 : vector<8x16xf32>
    %73 = vector.extract_strided_slice %70 {offsets = [0, 0], sizes = [8, 16], strides = [1, 1]} : vector<8x48xf32> to vector<8x16xf32>
    %74 = vector.extract_strided_slice %70 {offsets = [0, 16], sizes = [8, 16], strides = [1, 1]} : vector<8x48xf32> to vector<8x16xf32>
    %75 = vector.extract_strided_slice %70 {offsets = [0, 32], sizes = [8, 16], strides = [1, 1]} : vector<8x48xf32> to vector<8x16xf32>
    %76 = arith.mulf %74, %31 : vector<8x16xf32>
    %77 = arith.mulf %73, %72 : vector<8x16xf32>
    %78 = arith.addf %76, %77 : vector<8x16xf32>
    %79 = math.tanh %78 : vector<8x16xf32>
    %80 = arith.mulf %75, %79 : vector<8x16xf32>
    %cst_30 = arith.constant 0.000000e+00 : f32
    %81 = vector.broadcast %cst_30 : f32 to vector<8x16xf32>
    %82 = arith.maximumf %80, %81 : vector<8x16xf32>
    %cst_31 = arith.constant dense<0.000000e+00> : vector<8x128xf32>
    %83 = tpu.matmul %82, %1, %cst_31 {dimension_numbers = #tpu.dot_dimension_numbers<[1], [0], [0], [1], [0, 0, 1, 1], [], []>} : vector<8x16xf32>, vector<16x128xf32>, vector<8x128xf32> -> vector<8x128xf32>
    %84 = vector.broadcast %5 : vector<1x128xf32> to vector<8x128xf32>
    %85 = arith.addf %83, %84 : vector<8x128xf32>
    %cst_32 = arith.constant dense<0.000000e+00> : vector<8x128xf32>
    %86 = tpu.matmul %56, %3, %cst_32 {dimension_numbers = #tpu.dot_dimension_numbers<[1], [0], [0], [1], [0, 0, 1, 1], [], []>} : vector<8x32xf32>, vector<32x128xf32>, vector<8x128xf32> -> vector<8x128xf32>
    %87 = arith.addf %85, %86 : vector<8x128xf32>
    %88 = vector.extract_strided_slice %87 {offsets = [0, 0], sizes = [8, 96], strides = [1, 1]} : vector<8x128xf32> to vector<8x96xf32>
    %89 = arith.negf %88 : vector<8x96xf32>
    %90 = math.exp %89 : vector<8x96xf32>
    %cst_33 = arith.constant 1.000000e+00 : f32
    %91 = vector.broadcast %cst_33 : f32 to vector<8x96xf32>
    %92 = arith.addf %91, %90 : vector<8x96xf32>
    %93 = arith.divf %91, %92 : vector<8x96xf32>
    %94 = vector.extract_strided_slice %87 {offsets = [0, 96], sizes = [8, 32], strides = [1, 1]} : vector<8x128xf32> to vector<8x32xf32>
    %95 = math.tanh %94 : vector<8x32xf32>
    %96 = vector.extract_strided_slice %93 {offsets = [0, 0], sizes = [8, 32], strides = [1, 1]} : vector<8x96xf32> to vector<8x32xf32>
    %97 = vector.extract_strided_slice %93 {offsets = [0, 32], sizes = [8, 32], strides = [1, 1]} : vector<8x96xf32> to vector<8x32xf32>
    %98 = vector.extract_strided_slice %93 {offsets = [0, 64], sizes = [8, 32], strides = [1, 1]} : vector<8x96xf32> to vector<8x32xf32>
    %99 = arith.mulf %97, %54 : vector<8x32xf32>
    %100 = arith.mulf %96, %95 : vector<8x32xf32>
    %101 = arith.addf %99, %100 : vector<8x32xf32>
    %102 = math.tanh %101 : vector<8x32xf32>
    %103 = arith.mulf %98, %102 : vector<8x32xf32>
    %cst_34 = arith.constant 0.000000e+00 : f32
    %104 = vector.broadcast %cst_34 : f32 to vector<8x32xf32>
    %105 = arith.maximumf %103, %104 : vector<8x32xf32>
    %c32 = arith.constant 32 : index
    %c0_35 = arith.constant 0 : index
    %106 = vector.load %arg7[%c32, %c0_35] : memref<256x16xf32, #tpu.memory_space<vmem>>, vector<32x16xf32>
    %cst_36 = arith.constant dense<0.000000e+00> : vector<8x16xf32>
    %107 = tpu.matmul %105, %106, %cst_36 {dimension_numbers = #tpu.dot_dimension_numbers<[1], [0], [0], [1], [0, 0, 1, 1], [], []>} : vector<8x32xf32>, vector<32x16xf32>, vector<8x16xf32> -> vector<8x16xf32>
    %108 = arith.addf %61, %107 : vector<8x16xf32>
    %109 = vector.extract_strided_slice %9 {offsets = [16, 0], sizes = [8, 64], strides = [1, 1]} : vector<64x64xf32> to vector<8x64xf32>
    %cst_37 = arith.constant dense<0.000000e+00> : vector<8x64xf32>
    %110 = tpu.matmul %80, %2, %cst_37 {dimension_numbers = #tpu.dot_dimension_numbers<[1], [0], [0], [1], [0, 0, 1, 1], [], []>} : vector<8x16xf32>, vector<16x64xf32>, vector<8x64xf32> -> vector<8x64xf32>
    %111 = arith.addf %109, %110 : vector<8x64xf32>
    %112 = vector.extract_strided_slice %111 {offsets = [0, 0], sizes = [8, 48], strides = [1, 1]} : vector<8x64xf32> to vector<8x48xf32>
    %113 = arith.negf %112 : vector<8x48xf32>
    %114 = math.exp %113 : vector<8x48xf32>
    %cst_38 = arith.constant 1.000000e+00 : f32
    %115 = vector.broadcast %cst_38 : f32 to vector<8x48xf32>
    %116 = arith.addf %115, %114 : vector<8x48xf32>
    %117 = arith.divf %115, %116 : vector<8x48xf32>
    %118 = vector.extract_strided_slice %111 {offsets = [0, 48], sizes = [8, 16], strides = [1, 1]} : vector<8x64xf32> to vector<8x16xf32>
    %119 = math.tanh %118 : vector<8x16xf32>
    %120 = vector.extract_strided_slice %117 {offsets = [0, 0], sizes = [8, 16], strides = [1, 1]} : vector<8x48xf32> to vector<8x16xf32>
    %121 = vector.extract_strided_slice %117 {offsets = [0, 16], sizes = [8, 16], strides = [1, 1]} : vector<8x48xf32> to vector<8x16xf32>
    %122 = vector.extract_strided_slice %117 {offsets = [0, 32], sizes = [8, 16], strides = [1, 1]} : vector<8x48xf32> to vector<8x16xf32>
    %123 = arith.mulf %121, %78 : vector<8x16xf32>
    %124 = arith.mulf %120, %119 : vector<8x16xf32>
    %125 = arith.addf %123, %124 : vector<8x16xf32>
    %126 = math.tanh %125 : vector<8x16xf32>
    %127 = arith.mulf %122, %126 : vector<8x16xf32>
    %cst_39 = arith.constant 0.000000e+00 : f32
    %128 = vector.broadcast %cst_39 : f32 to vector<8x16xf32>
    %129 = arith.maximumf %127, %128 : vector<8x16xf32>
    %cst_40 = arith.constant dense<0.000000e+00> : vector<8x128xf32>
    %130 = tpu.matmul %129, %1, %cst_40 {dimension_numbers = #tpu.dot_dimension_numbers<[1], [0], [0], [1], [0, 0, 1, 1], [], []>} : vector<8x16xf32>, vector<16x128xf32>, vector<8x128xf32> -> vector<8x128xf32>
    %131 = vector.broadcast %5 : vector<1x128xf32> to vector<8x128xf32>
    %132 = arith.addf %130, %131 : vector<8x128xf32>
    %cst_41 = arith.constant dense<0.000000e+00> : vector<8x128xf32>
    %133 = tpu.matmul %103, %3, %cst_41 {dimension_numbers = #tpu.dot_dimension_numbers<[1], [0], [0], [1], [0, 0, 1, 1], [], []>} : vector<8x32xf32>, vector<32x128xf32>, vector<8x128xf32> -> vector<8x128xf32>
    %134 = arith.addf %132, %133 : vector<8x128xf32>
    %135 = vector.extract_strided_slice %134 {offsets = [0, 0], sizes = [8, 96], strides = [1, 1]} : vector<8x128xf32> to vector<8x96xf32>
    %136 = arith.negf %135 : vector<8x96xf32>
    %137 = math.exp %136 : vector<8x96xf32>
    %cst_42 = arith.constant 1.000000e+00 : f32
    %138 = vector.broadcast %cst_42 : f32 to vector<8x96xf32>
    %139 = arith.addf %138, %137 : vector<8x96xf32>
    %140 = arith.divf %138, %139 : vector<8x96xf32>
    %141 = vector.extract_strided_slice %134 {offsets = [0, 96], sizes = [8, 32], strides = [1, 1]} : vector<8x128xf32> to vector<8x32xf32>
    %142 = math.tanh %141 : vector<8x32xf32>
    %143 = vector.extract_strided_slice %140 {offsets = [0, 0], sizes = [8, 32], strides = [1, 1]} : vector<8x96xf32> to vector<8x32xf32>
    %144 = vector.extract_strided_slice %140 {offsets = [0, 32], sizes = [8, 32], strides = [1, 1]} : vector<8x96xf32> to vector<8x32xf32>
    %145 = vector.extract_strided_slice %140 {offsets = [0, 64], sizes = [8, 32], strides = [1, 1]} : vector<8x96xf32> to vector<8x32xf32>
    %146 = arith.mulf %144, %101 : vector<8x32xf32>
    %147 = arith.mulf %143, %142 : vector<8x32xf32>
    %148 = arith.addf %146, %147 : vector<8x32xf32>
    %149 = math.tanh %148 : vector<8x32xf32>
    %150 = arith.mulf %145, %149 : vector<8x32xf32>
    %cst_43 = arith.constant 0.000000e+00 : f32
    %151 = vector.broadcast %cst_43 : f32 to vector<8x32xf32>
    %152 = arith.maximumf %150, %151 : vector<8x32xf32>
    %c64 = arith.constant 64 : index
    %c0_44 = arith.constant 0 : index
    %153 = vector.load %arg7[%c64, %c0_44] : memref<256x16xf32, #tpu.memory_space<vmem>>, vector<32x16xf32>
    %cst_45 = arith.constant dense<0.000000e+00> : vector<8x16xf32>
    %154 = tpu.matmul %152, %153, %cst_45 {dimension_numbers = #tpu.dot_dimension_numbers<[1], [0], [0], [1], [0, 0, 1, 1], [], []>} : vector<8x32xf32>, vector<32x16xf32>, vector<8x16xf32> -> vector<8x16xf32>
    %155 = arith.addf %108, %154 : vector<8x16xf32>
    %156 = vector.extract_strided_slice %9 {offsets = [24, 0], sizes = [8, 64], strides = [1, 1]} : vector<64x64xf32> to vector<8x64xf32>
    %cst_46 = arith.constant dense<0.000000e+00> : vector<8x64xf32>
    %157 = tpu.matmul %127, %2, %cst_46 {dimension_numbers = #tpu.dot_dimension_numbers<[1], [0], [0], [1], [0, 0, 1, 1], [], []>} : vector<8x16xf32>, vector<16x64xf32>, vector<8x64xf32> -> vector<8x64xf32>
    %158 = arith.addf %156, %157 : vector<8x64xf32>
    %159 = vector.extract_strided_slice %158 {offsets = [0, 0], sizes = [8, 48], strides = [1, 1]} : vector<8x64xf32> to vector<8x48xf32>
    %160 = arith.negf %159 : vector<8x48xf32>
    %161 = math.exp %160 : vector<8x48xf32>
    %cst_47 = arith.constant 1.000000e+00 : f32
    %162 = vector.broadcast %cst_47 : f32 to vector<8x48xf32>
    %163 = arith.addf %162, %161 : vector<8x48xf32>
    %164 = arith.divf %162, %163 : vector<8x48xf32>
    %165 = vector.extract_strided_slice %158 {offsets = [0, 48], sizes = [8, 16], strides = [1, 1]} : vector<8x64xf32> to vector<8x16xf32>
    %166 = math.tanh %165 : vector<8x16xf32>
    %167 = vector.extract_strided_slice %164 {offsets = [0, 0], sizes = [8, 16], strides = [1, 1]} : vector<8x48xf32> to vector<8x16xf32>
    %168 = vector.extract_strided_slice %164 {offsets = [0, 16], sizes = [8, 16], strides = [1, 1]} : vector<8x48xf32> to vector<8x16xf32>
    %169 = vector.extract_strided_slice %164 {offsets = [0, 32], sizes = [8, 16], strides = [1, 1]} : vector<8x48xf32> to vector<8x16xf32>
    %170 = arith.mulf %168, %125 : vector<8x16xf32>
    %171 = arith.mulf %167, %166 : vector<8x16xf32>
    %172 = arith.addf %170, %171 : vector<8x16xf32>
    %173 = math.tanh %172 : vector<8x16xf32>
    %174 = arith.mulf %169, %173 : vector<8x16xf32>
    %cst_48 = arith.constant 0.000000e+00 : f32
    %175 = vector.broadcast %cst_48 : f32 to vector<8x16xf32>
    %176 = arith.maximumf %174, %175 : vector<8x16xf32>
    %cst_49 = arith.constant dense<0.000000e+00> : vector<8x128xf32>
    %177 = tpu.matmul %176, %1, %cst_49 {dimension_numbers = #tpu.dot_dimension_numbers<[1], [0], [0], [1], [0, 0, 1, 1], [], []>} : vector<8x16xf32>, vector<16x128xf32>, vector<8x128xf32> -> vector<8x128xf32>
    %178 = vector.broadcast %5 : vector<1x128xf32> to vector<8x128xf32>
    %179 = arith.addf %177, %178 : vector<8x128xf32>
    %cst_50 = arith.constant dense<0.000000e+00> : vector<8x128xf32>
    %180 = tpu.matmul %150, %3, %cst_50 {dimension_numbers = #tpu.dot_dimension_numbers<[1], [0], [0], [1], [0, 0, 1, 1], [], []>} : vector<8x32xf32>, vector<32x128xf32>, vector<8x128xf32> -> vector<8x128xf32>
    %181 = arith.addf %179, %180 : vector<8x128xf32>
    %182 = vector.extract_strided_slice %181 {offsets = [0, 0], sizes = [8, 96], strides = [1, 1]} : vector<8x128xf32> to vector<8x96xf32>
    %183 = arith.negf %182 : vector<8x96xf32>
    %184 = math.exp %183 : vector<8x96xf32>
    %cst_51 = arith.constant 1.000000e+00 : f32
    %185 = vector.broadcast %cst_51 : f32 to vector<8x96xf32>
    %186 = arith.addf %185, %184 : vector<8x96xf32>
    %187 = arith.divf %185, %186 : vector<8x96xf32>
    %188 = vector.extract_strided_slice %181 {offsets = [0, 96], sizes = [8, 32], strides = [1, 1]} : vector<8x128xf32> to vector<8x32xf32>
    %189 = math.tanh %188 : vector<8x32xf32>
    %190 = vector.extract_strided_slice %187 {offsets = [0, 0], sizes = [8, 32], strides = [1, 1]} : vector<8x96xf32> to vector<8x32xf32>
    %191 = vector.extract_strided_slice %187 {offsets = [0, 32], sizes = [8, 32], strides = [1, 1]} : vector<8x96xf32> to vector<8x32xf32>
    %192 = vector.extract_strided_slice %187 {offsets = [0, 64], sizes = [8, 32], strides = [1, 1]} : vector<8x96xf32> to vector<8x32xf32>
    %193 = arith.mulf %191, %148 : vector<8x32xf32>
    %194 = arith.mulf %190, %189 : vector<8x32xf32>
    %195 = arith.addf %193, %194 : vector<8x32xf32>
    %196 = math.tanh %195 : vector<8x32xf32>
    %197 = arith.mulf %192, %196 : vector<8x32xf32>
    %cst_52 = arith.constant 0.000000e+00 : f32
    %198 = vector.broadcast %cst_52 : f32 to vector<8x32xf32>
    %199 = arith.maximumf %197, %198 : vector<8x32xf32>
    %c96 = arith.constant 96 : index
    %c0_53 = arith.constant 0 : index
    %200 = vector.load %arg7[%c96, %c0_53] : memref<256x16xf32, #tpu.memory_space<vmem>>, vector<32x16xf32>
    %cst_54 = arith.constant dense<0.000000e+00> : vector<8x16xf32>
    %201 = tpu.matmul %199, %200, %cst_54 {dimension_numbers = #tpu.dot_dimension_numbers<[1], [0], [0], [1], [0, 0, 1, 1], [], []>} : vector<8x32xf32>, vector<32x16xf32>, vector<8x16xf32> -> vector<8x16xf32>
    %202 = arith.addf %155, %201 : vector<8x16xf32>
    %203 = vector.extract_strided_slice %9 {offsets = [32, 0], sizes = [8, 64], strides = [1, 1]} : vector<64x64xf32> to vector<8x64xf32>
    %cst_55 = arith.constant dense<0.000000e+00> : vector<8x64xf32>
    %204 = tpu.matmul %174, %2, %cst_55 {dimension_numbers = #tpu.dot_dimension_numbers<[1], [0], [0], [1], [0, 0, 1, 1], [], []>} : vector<8x16xf32>, vector<16x64xf32>, vector<8x64xf32> -> vector<8x64xf32>
    %205 = arith.addf %203, %204 : vector<8x64xf32>
    %206 = vector.extract_strided_slice %205 {offsets = [0, 0], sizes = [8, 48], strides = [1, 1]} : vector<8x64xf32> to vector<8x48xf32>
    %207 = arith.negf %206 : vector<8x48xf32>
    %208 = math.exp %207 : vector<8x48xf32>
    %cst_56 = arith.constant 1.000000e+00 : f32
    %209 = vector.broadcast %cst_56 : f32 to vector<8x48xf32>
    %210 = arith.addf %209, %208 : vector<8x48xf32>
    %211 = arith.divf %209, %210 : vector<8x48xf32>
    %212 = vector.extract_strided_slice %205 {offsets = [0, 48], sizes = [8, 16], strides = [1, 1]} : vector<8x64xf32> to vector<8x16xf32>
    %213 = math.tanh %212 : vector<8x16xf32>
    %214 = vector.extract_strided_slice %211 {offsets = [0, 0], sizes = [8, 16], strides = [1, 1]} : vector<8x48xf32> to vector<8x16xf32>
    %215 = vector.extract_strided_slice %211 {offsets = [0, 16], sizes = [8, 16], strides = [1, 1]} : vector<8x48xf32> to vector<8x16xf32>
    %216 = vector.extract_strided_slice %211 {offsets = [0, 32], sizes = [8, 16], strides = [1, 1]} : vector<8x48xf32> to vector<8x16xf32>
    %217 = arith.mulf %215, %172 : vector<8x16xf32>
    %218 = arith.mulf %214, %213 : vector<8x16xf32>
    %219 = arith.addf %217, %218 : vector<8x16xf32>
    %220 = math.tanh %219 : vector<8x16xf32>
    %221 = arith.mulf %216, %220 : vector<8x16xf32>
    %cst_57 = arith.constant 0.000000e+00 : f32
    %222 = vector.broadcast %cst_57 : f32 to vector<8x16xf32>
    %223 = arith.maximumf %221, %222 : vector<8x16xf32>
    %cst_58 = arith.constant dense<0.000000e+00> : vector<8x128xf32>
    %224 = tpu.matmul %223, %1, %cst_58 {dimension_numbers = #tpu.dot_dimension_numbers<[1], [0], [0], [1], [0, 0, 1, 1], [], []>} : vector<8x16xf32>, vector<16x128xf32>, vector<8x128xf32> -> vector<8x128xf32>
    %225 = vector.broadcast %5 : vector<1x128xf32> to vector<8x128xf32>
    %226 = arith.addf %224, %225 : vector<8x128xf32>
    %cst_59 = arith.constant dense<0.000000e+00> : vector<8x128xf32>
    %227 = tpu.matmul %197, %3, %cst_59 {dimension_numbers = #tpu.dot_dimension_numbers<[1], [0], [0], [1], [0, 0, 1, 1], [], []>} : vector<8x32xf32>, vector<32x128xf32>, vector<8x128xf32> -> vector<8x128xf32>
    %228 = arith.addf %226, %227 : vector<8x128xf32>
    %229 = vector.extract_strided_slice %228 {offsets = [0, 0], sizes = [8, 96], strides = [1, 1]} : vector<8x128xf32> to vector<8x96xf32>
    %230 = arith.negf %229 : vector<8x96xf32>
    %231 = math.exp %230 : vector<8x96xf32>
    %cst_60 = arith.constant 1.000000e+00 : f32
    %232 = vector.broadcast %cst_60 : f32 to vector<8x96xf32>
    %233 = arith.addf %232, %231 : vector<8x96xf32>
    %234 = arith.divf %232, %233 : vector<8x96xf32>
    %235 = vector.extract_strided_slice %228 {offsets = [0, 96], sizes = [8, 32], strides = [1, 1]} : vector<8x128xf32> to vector<8x32xf32>
    %236 = math.tanh %235 : vector<8x32xf32>
    %237 = vector.extract_strided_slice %234 {offsets = [0, 0], sizes = [8, 32], strides = [1, 1]} : vector<8x96xf32> to vector<8x32xf32>
    %238 = vector.extract_strided_slice %234 {offsets = [0, 32], sizes = [8, 32], strides = [1, 1]} : vector<8x96xf32> to vector<8x32xf32>
    %239 = vector.extract_strided_slice %234 {offsets = [0, 64], sizes = [8, 32], strides = [1, 1]} : vector<8x96xf32> to vector<8x32xf32>
    %240 = arith.mulf %238, %195 : vector<8x32xf32>
    %241 = arith.mulf %237, %236 : vector<8x32xf32>
    %242 = arith.addf %240, %241 : vector<8x32xf32>
    %243 = math.tanh %242 : vector<8x32xf32>
    %244 = arith.mulf %239, %243 : vector<8x32xf32>
    %cst_61 = arith.constant 0.000000e+00 : f32
    %245 = vector.broadcast %cst_61 : f32 to vector<8x32xf32>
    %246 = arith.maximumf %244, %245 : vector<8x32xf32>
    %c128 = arith.constant 128 : index
    %c0_62 = arith.constant 0 : index
    %247 = vector.load %arg7[%c128, %c0_62] : memref<256x16xf32, #tpu.memory_space<vmem>>, vector<32x16xf32>
    %cst_63 = arith.constant dense<0.000000e+00> : vector<8x16xf32>
    %248 = tpu.matmul %246, %247, %cst_63 {dimension_numbers = #tpu.dot_dimension_numbers<[1], [0], [0], [1], [0, 0, 1, 1], [], []>} : vector<8x32xf32>, vector<32x16xf32>, vector<8x16xf32> -> vector<8x16xf32>
    %249 = arith.addf %202, %248 : vector<8x16xf32>
    %250 = vector.extract_strided_slice %9 {offsets = [40, 0], sizes = [8, 64], strides = [1, 1]} : vector<64x64xf32> to vector<8x64xf32>
    %cst_64 = arith.constant dense<0.000000e+00> : vector<8x64xf32>
    %251 = tpu.matmul %221, %2, %cst_64 {dimension_numbers = #tpu.dot_dimension_numbers<[1], [0], [0], [1], [0, 0, 1, 1], [], []>} : vector<8x16xf32>, vector<16x64xf32>, vector<8x64xf32> -> vector<8x64xf32>
    %252 = arith.addf %250, %251 : vector<8x64xf32>
    %253 = vector.extract_strided_slice %252 {offsets = [0, 0], sizes = [8, 48], strides = [1, 1]} : vector<8x64xf32> to vector<8x48xf32>
    %254 = arith.negf %253 : vector<8x48xf32>
    %255 = math.exp %254 : vector<8x48xf32>
    %cst_65 = arith.constant 1.000000e+00 : f32
    %256 = vector.broadcast %cst_65 : f32 to vector<8x48xf32>
    %257 = arith.addf %256, %255 : vector<8x48xf32>
    %258 = arith.divf %256, %257 : vector<8x48xf32>
    %259 = vector.extract_strided_slice %252 {offsets = [0, 48], sizes = [8, 16], strides = [1, 1]} : vector<8x64xf32> to vector<8x16xf32>
    %260 = math.tanh %259 : vector<8x16xf32>
    %261 = vector.extract_strided_slice %258 {offsets = [0, 0], sizes = [8, 16], strides = [1, 1]} : vector<8x48xf32> to vector<8x16xf32>
    %262 = vector.extract_strided_slice %258 {offsets = [0, 16], sizes = [8, 16], strides = [1, 1]} : vector<8x48xf32> to vector<8x16xf32>
    %263 = vector.extract_strided_slice %258 {offsets = [0, 32], sizes = [8, 16], strides = [1, 1]} : vector<8x48xf32> to vector<8x16xf32>
    %264 = arith.mulf %262, %219 : vector<8x16xf32>
    %265 = arith.mulf %261, %260 : vector<8x16xf32>
    %266 = arith.addf %264, %265 : vector<8x16xf32>
    %267 = math.tanh %266 : vector<8x16xf32>
    %268 = arith.mulf %263, %267 : vector<8x16xf32>
    %cst_66 = arith.constant 0.000000e+00 : f32
    %269 = vector.broadcast %cst_66 : f32 to vector<8x16xf32>
    %270 = arith.maximumf %268, %269 : vector<8x16xf32>
    %cst_67 = arith.constant dense<0.000000e+00> : vector<8x128xf32>
    %271 = tpu.matmul %270, %1, %cst_67 {dimension_numbers = #tpu.dot_dimension_numbers<[1], [0], [0], [1], [0, 0, 1, 1], [], []>} : vector<8x16xf32>, vector<16x128xf32>, vector<8x128xf32> -> vector<8x128xf32>
    %272 = vector.broadcast %5 : vector<1x128xf32> to vector<8x128xf32>
    %273 = arith.addf %271, %272 : vector<8x128xf32>
    %cst_68 = arith.constant dense<0.000000e+00> : vector<8x128xf32>
    %274 = tpu.matmul %244, %3, %cst_68 {dimension_numbers = #tpu.dot_dimension_numbers<[1], [0], [0], [1], [0, 0, 1, 1], [], []>} : vector<8x32xf32>, vector<32x128xf32>, vector<8x128xf32> -> vector<8x128xf32>
    %275 = arith.addf %273, %274 : vector<8x128xf32>
    %276 = vector.extract_strided_slice %275 {offsets = [0, 0], sizes = [8, 96], strides = [1, 1]} : vector<8x128xf32> to vector<8x96xf32>
    %277 = arith.negf %276 : vector<8x96xf32>
    %278 = math.exp %277 : vector<8x96xf32>
    %cst_69 = arith.constant 1.000000e+00 : f32
    %279 = vector.broadcast %cst_69 : f32 to vector<8x96xf32>
    %280 = arith.addf %279, %278 : vector<8x96xf32>
    %281 = arith.divf %279, %280 : vector<8x96xf32>
    %282 = vector.extract_strided_slice %275 {offsets = [0, 96], sizes = [8, 32], strides = [1, 1]} : vector<8x128xf32> to vector<8x32xf32>
    %283 = math.tanh %282 : vector<8x32xf32>
    %284 = vector.extract_strided_slice %281 {offsets = [0, 0], sizes = [8, 32], strides = [1, 1]} : vector<8x96xf32> to vector<8x32xf32>
    %285 = vector.extract_strided_slice %281 {offsets = [0, 32], sizes = [8, 32], strides = [1, 1]} : vector<8x96xf32> to vector<8x32xf32>
    %286 = vector.extract_strided_slice %281 {offsets = [0, 64], sizes = [8, 32], strides = [1, 1]} : vector<8x96xf32> to vector<8x32xf32>
    %287 = arith.mulf %285, %242 : vector<8x32xf32>
    %288 = arith.mulf %284, %283 : vector<8x32xf32>
    %289 = arith.addf %287, %288 : vector<8x32xf32>
    %290 = math.tanh %289 : vector<8x32xf32>
    %291 = arith.mulf %286, %290 : vector<8x32xf32>
    %cst_70 = arith.constant 0.000000e+00 : f32
    %292 = vector.broadcast %cst_70 : f32 to vector<8x32xf32>
    %293 = arith.maximumf %291, %292 : vector<8x32xf32>
    %c160 = arith.constant 160 : index
    %c0_71 = arith.constant 0 : index
    %294 = vector.load %arg7[%c160, %c0_71] : memref<256x16xf32, #tpu.memory_space<vmem>>, vector<32x16xf32>
    %cst_72 = arith.constant dense<0.000000e+00> : vector<8x16xf32>
    %295 = tpu.matmul %293, %294, %cst_72 {dimension_numbers = #tpu.dot_dimension_numbers<[1], [0], [0], [1], [0, 0, 1, 1], [], []>} : vector<8x32xf32>, vector<32x16xf32>, vector<8x16xf32> -> vector<8x16xf32>
    %296 = arith.addf %249, %295 : vector<8x16xf32>
    %297 = vector.extract_strided_slice %9 {offsets = [48, 0], sizes = [8, 64], strides = [1, 1]} : vector<64x64xf32> to vector<8x64xf32>
    %cst_73 = arith.constant dense<0.000000e+00> : vector<8x64xf32>
    %298 = tpu.matmul %268, %2, %cst_73 {dimension_numbers = #tpu.dot_dimension_numbers<[1], [0], [0], [1], [0, 0, 1, 1], [], []>} : vector<8x16xf32>, vector<16x64xf32>, vector<8x64xf32> -> vector<8x64xf32>
    %299 = arith.addf %297, %298 : vector<8x64xf32>
    %300 = vector.extract_strided_slice %299 {offsets = [0, 0], sizes = [8, 48], strides = [1, 1]} : vector<8x64xf32> to vector<8x48xf32>
    %301 = arith.negf %300 : vector<8x48xf32>
    %302 = math.exp %301 : vector<8x48xf32>
    %cst_74 = arith.constant 1.000000e+00 : f32
    %303 = vector.broadcast %cst_74 : f32 to vector<8x48xf32>
    %304 = arith.addf %303, %302 : vector<8x48xf32>
    %305 = arith.divf %303, %304 : vector<8x48xf32>
    %306 = vector.extract_strided_slice %299 {offsets = [0, 48], sizes = [8, 16], strides = [1, 1]} : vector<8x64xf32> to vector<8x16xf32>
    %307 = math.tanh %306 : vector<8x16xf32>
    %308 = vector.extract_strided_slice %305 {offsets = [0, 0], sizes = [8, 16], strides = [1, 1]} : vector<8x48xf32> to vector<8x16xf32>
    %309 = vector.extract_strided_slice %305 {offsets = [0, 16], sizes = [8, 16], strides = [1, 1]} : vector<8x48xf32> to vector<8x16xf32>
    %310 = vector.extract_strided_slice %305 {offsets = [0, 32], sizes = [8, 16], strides = [1, 1]} : vector<8x48xf32> to vector<8x16xf32>
    %311 = arith.mulf %309, %266 : vector<8x16xf32>
    %312 = arith.mulf %308, %307 : vector<8x16xf32>
    %313 = arith.addf %311, %312 : vector<8x16xf32>
    %314 = math.tanh %313 : vector<8x16xf32>
    %315 = arith.mulf %310, %314 : vector<8x16xf32>
    %cst_75 = arith.constant 0.000000e+00 : f32
    %316 = vector.broadcast %cst_75 : f32 to vector<8x16xf32>
    %317 = arith.maximumf %315, %316 : vector<8x16xf32>
    %cst_76 = arith.constant dense<0.000000e+00> : vector<8x128xf32>
    %318 = tpu.matmul %317, %1, %cst_76 {dimension_numbers = #tpu.dot_dimension_numbers<[1], [0], [0], [1], [0, 0, 1, 1], [], []>} : vector<8x16xf32>, vector<16x128xf32>, vector<8x128xf32> -> vector<8x128xf32>
    %319 = vector.broadcast %5 : vector<1x128xf32> to vector<8x128xf32>
    %320 = arith.addf %318, %319 : vector<8x128xf32>
    %cst_77 = arith.constant dense<0.000000e+00> : vector<8x128xf32>
    %321 = tpu.matmul %291, %3, %cst_77 {dimension_numbers = #tpu.dot_dimension_numbers<[1], [0], [0], [1], [0, 0, 1, 1], [], []>} : vector<8x32xf32>, vector<32x128xf32>, vector<8x128xf32> -> vector<8x128xf32>
    %322 = arith.addf %320, %321 : vector<8x128xf32>
    %323 = vector.extract_strided_slice %322 {offsets = [0, 0], sizes = [8, 96], strides = [1, 1]} : vector<8x128xf32> to vector<8x96xf32>
    %324 = arith.negf %323 : vector<8x96xf32>
    %325 = math.exp %324 : vector<8x96xf32>
    %cst_78 = arith.constant 1.000000e+00 : f32
    %326 = vector.broadcast %cst_78 : f32 to vector<8x96xf32>
    %327 = arith.addf %326, %325 : vector<8x96xf32>
    %328 = arith.divf %326, %327 : vector<8x96xf32>
    %329 = vector.extract_strided_slice %322 {offsets = [0, 96], sizes = [8, 32], strides = [1, 1]} : vector<8x128xf32> to vector<8x32xf32>
    %330 = math.tanh %329 : vector<8x32xf32>
    %331 = vector.extract_strided_slice %328 {offsets = [0, 0], sizes = [8, 32], strides = [1, 1]} : vector<8x96xf32> to vector<8x32xf32>
    %332 = vector.extract_strided_slice %328 {offsets = [0, 32], sizes = [8, 32], strides = [1, 1]} : vector<8x96xf32> to vector<8x32xf32>
    %333 = vector.extract_strided_slice %328 {offsets = [0, 64], sizes = [8, 32], strides = [1, 1]} : vector<8x96xf32> to vector<8x32xf32>
    %334 = arith.mulf %332, %289 : vector<8x32xf32>
    %335 = arith.mulf %331, %330 : vector<8x32xf32>
    %336 = arith.addf %334, %335 : vector<8x32xf32>
    %337 = math.tanh %336 : vector<8x32xf32>
    %338 = arith.mulf %333, %337 : vector<8x32xf32>
    %cst_79 = arith.constant 0.000000e+00 : f32
    %339 = vector.broadcast %cst_79 : f32 to vector<8x32xf32>
    %340 = arith.maximumf %338, %339 : vector<8x32xf32>
    %c192 = arith.constant 192 : index
    %c0_80 = arith.constant 0 : index
    %341 = vector.load %arg7[%c192, %c0_80] : memref<256x16xf32, #tpu.memory_space<vmem>>, vector<32x16xf32>
    %cst_81 = arith.constant dense<0.000000e+00> : vector<8x16xf32>
    %342 = tpu.matmul %340, %341, %cst_81 {dimension_numbers = #tpu.dot_dimension_numbers<[1], [0], [0], [1], [0, 0, 1, 1], [], []>} : vector<8x32xf32>, vector<32x16xf32>, vector<8x16xf32> -> vector<8x16xf32>
    %343 = arith.addf %296, %342 : vector<8x16xf32>
    %344 = vector.extract_strided_slice %9 {offsets = [56, 0], sizes = [8, 64], strides = [1, 1]} : vector<64x64xf32> to vector<8x64xf32>
    %cst_82 = arith.constant dense<0.000000e+00> : vector<8x64xf32>
    %345 = tpu.matmul %315, %2, %cst_82 {dimension_numbers = #tpu.dot_dimension_numbers<[1], [0], [0], [1], [0, 0, 1, 1], [], []>} : vector<8x16xf32>, vector<16x64xf32>, vector<8x64xf32> -> vector<8x64xf32>
    %346 = arith.addf %344, %345 : vector<8x64xf32>
    %347 = vector.extract_strided_slice %346 {offsets = [0, 0], sizes = [8, 48], strides = [1, 1]} : vector<8x64xf32> to vector<8x48xf32>
    %348 = arith.negf %347 : vector<8x48xf32>
    %349 = math.exp %348 : vector<8x48xf32>
    %cst_83 = arith.constant 1.000000e+00 : f32
    %350 = vector.broadcast %cst_83 : f32 to vector<8x48xf32>
    %351 = arith.addf %350, %349 : vector<8x48xf32>
    %352 = arith.divf %350, %351 : vector<8x48xf32>
    %353 = vector.extract_strided_slice %346 {offsets = [0, 48], sizes = [8, 16], strides = [1, 1]} : vector<8x64xf32> to vector<8x16xf32>
    %354 = math.tanh %353 : vector<8x16xf32>
    %355 = vector.extract_strided_slice %352 {offsets = [0, 0], sizes = [8, 16], strides = [1, 1]} : vector<8x48xf32> to vector<8x16xf32>
    %356 = vector.extract_strided_slice %352 {offsets = [0, 16], sizes = [8, 16], strides = [1, 1]} : vector<8x48xf32> to vector<8x16xf32>
    %357 = vector.extract_strided_slice %352 {offsets = [0, 32], sizes = [8, 16], strides = [1, 1]} : vector<8x48xf32> to vector<8x16xf32>
    %358 = arith.mulf %356, %313 : vector<8x16xf32>
    %359 = arith.mulf %355, %354 : vector<8x16xf32>
    %360 = arith.addf %358, %359 : vector<8x16xf32>
    %361 = math.tanh %360 : vector<8x16xf32>
    %362 = arith.mulf %357, %361 : vector<8x16xf32>
    %cst_84 = arith.constant 0.000000e+00 : f32
    %363 = vector.broadcast %cst_84 : f32 to vector<8x16xf32>
    %364 = arith.maximumf %362, %363 : vector<8x16xf32>
    %cst_85 = arith.constant dense<0.000000e+00> : vector<8x128xf32>
    %365 = tpu.matmul %364, %1, %cst_85 {dimension_numbers = #tpu.dot_dimension_numbers<[1], [0], [0], [1], [0, 0, 1, 1], [], []>} : vector<8x16xf32>, vector<16x128xf32>, vector<8x128xf32> -> vector<8x128xf32>
    %366 = vector.broadcast %5 : vector<1x128xf32> to vector<8x128xf32>
    %367 = arith.addf %365, %366 : vector<8x128xf32>
    %cst_86 = arith.constant dense<0.000000e+00> : vector<8x128xf32>
    %368 = tpu.matmul %338, %3, %cst_86 {dimension_numbers = #tpu.dot_dimension_numbers<[1], [0], [0], [1], [0, 0, 1, 1], [], []>} : vector<8x32xf32>, vector<32x128xf32>, vector<8x128xf32> -> vector<8x128xf32>
    %369 = arith.addf %367, %368 : vector<8x128xf32>
    %370 = vector.extract_strided_slice %369 {offsets = [0, 0], sizes = [8, 96], strides = [1, 1]} : vector<8x128xf32> to vector<8x96xf32>
    %371 = arith.negf %370 : vector<8x96xf32>
    %372 = math.exp %371 : vector<8x96xf32>
    %cst_87 = arith.constant 1.000000e+00 : f32
    %373 = vector.broadcast %cst_87 : f32 to vector<8x96xf32>
    %374 = arith.addf %373, %372 : vector<8x96xf32>
    %375 = arith.divf %373, %374 : vector<8x96xf32>
    %376 = vector.extract_strided_slice %369 {offsets = [0, 96], sizes = [8, 32], strides = [1, 1]} : vector<8x128xf32> to vector<8x32xf32>
    %377 = math.tanh %376 : vector<8x32xf32>
    %378 = vector.extract_strided_slice %375 {offsets = [0, 0], sizes = [8, 32], strides = [1, 1]} : vector<8x96xf32> to vector<8x32xf32>
    %379 = vector.extract_strided_slice %375 {offsets = [0, 32], sizes = [8, 32], strides = [1, 1]} : vector<8x96xf32> to vector<8x32xf32>
    %380 = vector.extract_strided_slice %375 {offsets = [0, 64], sizes = [8, 32], strides = [1, 1]} : vector<8x96xf32> to vector<8x32xf32>
    %381 = arith.mulf %379, %336 : vector<8x32xf32>
    %382 = arith.mulf %378, %377 : vector<8x32xf32>
    %383 = arith.addf %381, %382 : vector<8x32xf32>
    %384 = math.tanh %383 : vector<8x32xf32>
    %385 = arith.mulf %380, %384 : vector<8x32xf32>
    %cst_88 = arith.constant 0.000000e+00 : f32
    %386 = vector.broadcast %cst_88 : f32 to vector<8x32xf32>
    %387 = arith.maximumf %385, %386 : vector<8x32xf32>
    %c224 = arith.constant 224 : index
    %c0_89 = arith.constant 0 : index
    %388 = vector.load %arg7[%c224, %c0_89] : memref<256x16xf32, #tpu.memory_space<vmem>>, vector<32x16xf32>
    %cst_90 = arith.constant dense<0.000000e+00> : vector<8x16xf32>
    %389 = tpu.matmul %387, %388, %cst_90 {dimension_numbers = #tpu.dot_dimension_numbers<[1], [0], [0], [1], [0, 0, 1, 1], [], []>} : vector<8x32xf32>, vector<32x16xf32>, vector<8x16xf32> -> vector<8x16xf32>
    %390 = arith.addf %343, %389 : vector<8x16xf32>
    %c0_91 = arith.constant 0 : index
    %c0_92 = arith.constant 0 : index
    %391 = vector.load %arg8[%c0_91, %c0_92] : memref<1x16xf32, #tpu.memory_space<vmem>>, vector<1x16xf32>
    %392 = vector.broadcast %391 : vector<1x16xf32> to vector<8x16xf32>
    %393 = arith.addf %390, %392 : vector<8x16xf32>
    %cst_93 = arith.constant 0.000000e+00 : f32
    %394 = vector.broadcast %cst_93 : f32 to vector<8x16xf32>
    %395 = arith.maximumf %393, %394 : vector<8x16xf32>
    %c0_94 = arith.constant 0 : index
    %c0_95 = arith.constant 0 : index
    %396 = vector.load %arg9[%c0_94, %c0_95] : memref<16x1xf32, #tpu.memory_space<vmem>>, vector<16x1xf32>
    %cst_96 = arith.constant dense<0.000000e+00> : vector<8x1xf32>
    %397 = tpu.matmul %395, %396, %cst_96 {dimension_numbers = #tpu.dot_dimension_numbers<[1], [0], [0], [1], [0, 0, 1, 1], [], []>} : vector<8x16xf32>, vector<16x1xf32>, vector<8x1xf32> -> vector<8x1xf32>
    %c0_97 = arith.constant 0 : index
    %c0_98 = arith.constant 0 : index
    %398 = vector.load %arg10[%c0_97, %c0_98] : memref<1x1xf32, #tpu.memory_space<vmem>>, vector<1x1xf32>
    %399 = vector.broadcast %398 : vector<1x1xf32> to vector<8x1xf32>
    %400 = arith.addf %397, %399 : vector<8x1xf32>
    %401 = vector.extract_strided_slice %400 {offsets = [0, 0], sizes = [2, 1], strides = [1, 1]} : vector<8x1xf32> to vector<2x1xf32>
    %c0_99 = arith.constant 0 : index
    %c0_100 = arith.constant 0 : index
    %402 = vector.load %arg11[%c0_99, %c0_100] : memref<2x1xf32, #tpu.memory_space<vmem>>, vector<2x1xf32>
    tpu.vector_store %arg11[%c0_99, %c0_100], %401 {strides = array<i32>} : memref<2x1xf32, #tpu.memory_space<vmem>>, vector<2x1xf32>,
    return
  }
}

</mosaic_0001>

<bundles_post_ra>
// kernel: forward.1
= control target key start
LH: loop header
LB: loop body
LE: loop exit
PB: predicated region body
PF: predicated region fallthrough
CT: control target
= control target key end

     0   :  { %vm87_vm0 = vcmask 1043456   ;;  %vm62_vm1 = vcmask 31744   ;;  %v1837_v4 = vmov 0.0   ;;  %s1838_s25 = smov 80   ;;  %s1839_s26 = smov 16   ;;  %vm132_vm6 = vcmask 130048   ;;  %s2383_s1 = inlined_call_operand.vmem [shape: f32[4,64], index: 1, kind: input, shape index: {}]   ;;  %s2384_s2 = inlined_call_operand.vmem [shape: f32[16,64], index: 2, kind: input, shape index: {}]   ;;  %s2385_s0 = inlined_call_operand.vmem [shape: f32[64,4], index: 0, kind: input, shape index: {}]   ;;  %s2386_s3 = inlined_call_operand.vmem [shape: f32[1,64], index: 3, kind: input, shape index: {}]   ;;  %s2387_s5 = inlined_call_operand.vmem [shape: f32[32,128], index: 5, kind: input, shape index: {}]   ;;  %s2388_s4 = inlined_call_operand.vmem [shape: f32[16,128], index: 4, kind: input, shape index: {}]   ;;  %s2389_s6 = inlined_call_operand.vmem [shape: f32[1,128], index: 6, kind: input, shape index: {}]   ;;  %s2390_s7 = inlined_call_operand.vmem [shape: f32[256,16], index: 7, kind: input, shape index: {}]   ;;  %s2391_s8 = inlined_call_operand.vmem [shape: f32[1,16], index: 8, kind: input, shape index: {}]   ;;  %s2392_s9 = inlined_call_operand.vmem [shape: f32[16,1], index: 9, kind: input, shape index: {}]   ;;  %s2393_s10 = inlined_call_operand.<no memory space> [shape: f32[1,1], index: 10, kind: input, shape index: {}]   ;;  %s2394_s11 = inlined_call_operand.vmem [shape: f32[2,1], index: 11, kind: output, shape index: {}]  }
   0x1   :  { %v40_v0 = vld [vmem:[%s2383_s1] sm:$0xf]  ;;  %v1909_v1 = vld [vmem:[%s2384_s2 + $0x8] sm:$0xff]  ;;  %s1840_s29 = smov 96   ;;  %v1950_v34 = vld [vmem:[%s2387_s5 + $0x18] sm:$0xff]  ;;  %s1841_s1 = smov 32  }
   0x2   :  { %v51_v2 = vld [vmem:[%s2385_s0] sm:$0xff]  ;;  %1635 = vmatpush.msk.msra.mxu0 %vm87_vm0, %v40_v0  ;;  %150 = vmatpush.msra.mxu1 %v1909_v1  ;;  %v52_v30 = vld [vmem:[%s2385_s0 + $0x8] sm:$0xff]  ;;  %v1960_v36 = vld [vmem:[%s2387_s5 + $0x10] sm:$0xff]  ;;  %vm223_vm15 = vcmask 261120  }
   0x3   :  { %v1918_v3 = vld [vmem:[%s2384_s2] sm:$0xff]  ;;  %1636 = vmatmul.msk.f32.vlgmr.msra.gmra.mxu0 %vm62_vm1, %v51_v2  ;;  %v1955_v35 = vld [vmem:[%s2388_s4 + $0x8] sm:$0xff]  ;;  %238 = vmatpush.msra.mxu3 %v1950_v34  ;;  %s1842_s2 = smov 64  }
   0x4   :  { %151 = vmatpush.msra.mxu1 %v1918_v3  ;;  %1247 = vmatpush.msrb.mxu0 %v1909_v1  ;;  %v1932_v5 = vld [vmem:[%s2386_s3] ss:$0 sm:$0xff]  ;;  %v1972_v38 = vld [vmem:[%s2387_s5 + $0x8] sm:$0xff] }
   0x5   :  { %152 = vmatmul.f32.vlgmr.msra.gmra.mxu1 %v1837_v4  ;;  %217 = vmatpush.msra.mxu2 %v1955_v35  ;;  %v1967_v37 = vld [vmem:[%s2388_s4] sm:$0xff] }
   0x6   :  { %308 = vmatpush.msrb.mxu1 %v1909_v1  ;;  %1248 = vmatpush.msrb.mxu0 %v1918_v3  ;;  %v1982_v39 = vld [vmem:[%s2387_s5] sm:$0xff] }
   0x7   :  { %239 = vmatpush.msra.mxu3 %v1960_v36  ;;  %218 = vmatpush.msra.mxu2 %v1967_v37  ;;  %v1999_v47 = vld [vmem:[%s2389_s6] ss:$0 sm:$0xff] }
   0x8   :  { %1430 = vmatpush.msra.mxu0 %v1909_v1  ;;  %309 = vmatpush.msrb.mxu1 %v1918_v3 }
   0x9   :  { %372 = vmatpush.msrb.mxu2 %v1955_v35  ;;  %240 = vmatpush.msra.mxu3 %v1972_v38 }
   0xa   :  { %1431 = vmatpush.msra.mxu0 %v1918_v3 }
   0xb   :  { %1637 = vmatmul.msk.f32.gmra.mxu0 %vm62_vm1, %v52_v30  ;;  %373 = vmatpush.msrb.mxu2 %v1967_v37 }
   0xc   :  { %241 = vmatpush.msra.mxu3 %v1982_v39 }
   0xd   :  { %242 = vmatmul.f32.vlgmr.msra.gmra.mxu3 %v1837_v4 }
   0xe   :  { %395 = vmatpush.msrb.mxu3 %v1950_v34 }
  0x10   :  { %396 = vmatpush.msrb.mxu3 %v1960_v36 }
  0x12   :  { %397 = vmatpush.msrb.mxu3 %v1972_v38 }
  0x14   :  { %398 = vmatpush.msrb.mxu3 %v1982_v39 }
  0x16   :  { %515 = vmatpush.msra.mxu3 %v1909_v1 }
  0x18   :  { %516 = vmatpush.msra.mxu3 %v1918_v3 }
  0x80   :  { %v108_v6 = vpop.f32.mrf.mxu0 }
  0x81   :  { %v109_v7 = vadd.f32 %v1932_v5, %v108_v6 }
  0x82   :  { %v153_v8 = vpop.f32.mrf.mxu1 }
  0x83   :  { %v156_v9 = vadd.f32 %v153_v8, %v109_v7 }
  0x85   :  { %1701 = vtanh.f32 %v156_v9  ;;  %v1644_v11 = vmul.f32 -1.442695, %v156_v9 }
  0x87   :  { %1703 = vpow2.f32 %v1644_v11 }
  0x88   :  { %v111_v42 = vpop.f32.mrf.mxu0 }
  0x89   :  { %v112_v43 = vadd.f32 %v1932_v5, %v111_v42  ;;  %v53_v42 = vld [vmem:[%s2385_s0 + $0x10] sm:$0xff] }
  0x8a   :  { %1638 = vmatmul.msk.f32.gmra.mxu0 %vm62_vm1, %v53_v42 }
  0x8b   :  { %v1702_v10 = vpop.eup %1701 }
  0x8c   :  { %179 = vrot.lane.b32.xlu0 %v1702_v10, %s1838_s25 }
  0x8d   :  { %v1704_v12 = vpop.eup %1703 }
  0x8e   :  { %v160_v13 = vadd.f32 1.0, %v1704_v12 }
  0x90   :  { %1705 = vrcp.f32 %v160_v13  ;;  %v172_v19 = vand.u32 2147483648, %v160_v13  ;;  %vm166_vm3 = vweird.f32 %v160_v13  ;;  %v170_v20 = vand.u32 2147483647, %v160_v13  ;;  %v243_v49 = vpop.f32.mrf.mxu3 }
  0x92   :  { %v173_v22 = vor.u32 1.1754944e-38, %v172_v19  ;;  %vm171_vm5 = vcmp.eq.f32.partialorder %v170_v20, 8.507059e+37 }
  0x96   :  { %v1706_v14 = vpop.eup %1705 }
  0x97   :  { %v162_v15 = vmul.f32 %v1706_v14, %v160_v13  ;;  %vm167_vm2 = vweird.f32 %v1706_v14 }
  0x98   :  { %vm168_vm4 = vmor %vm166_vm3, %vm167_vm2 }
  0x99   :  { %v163_v16 = vsub.f32 1.0, %v162_v15 }
  0x9b   :  { %v164_v17 = vmul.f32 %v1706_v14, %v163_v16 }
  0x9d   :  { %v165_v18 = vadd.f32 %v1706_v14, %v164_v17 }
  0x9f   :  { %v169_v21 = vsel %vm168_vm4, %v1706_v14, %v165_v18 }
  0xa0   :  { %v174_v24 = vsel %vm171_vm5, %v173_v22, %v169_v21 }
  0xa1   :  { %v177_v26 = vmul.f32 0.0, %v174_v24 }
  0xfe   :  { %v180_v23 = vpop.permute.xlu0 %179 }
  0xff   :  { %v182_v25 = vmul.f32 %v180_v23, %v174_v24 }
 0x101   :  { %184 = vrot.lane.b32.xlu0 %v182_v25, %s1839_s26 }
 0x173   :  { %v185_v27 = vpop.permute.xlu0 %184 }
 0x174   :  { %v1937_v28 = vadd.f32 %v185_v27, %v177_v26 }
 0x176   :  { %1707 = vtanh.f32 %v1937_v28 }
 0x17c   :  { %v1708_v29 = vpop.eup %1707 }
 0x17d   :  { %190 = vrot.lane.b32.xlu1 %v1708_v29, %s1839_s26 }
 0x1ef   :  { %v191_v31 = vpop.permute.xlu1 %190 }
 0x1f0   :  { %v193_v32 = vmul.f32 %v191_v31, %v174_v24 }
 0x1f2   :  { %v194_v33 = vmax.f32 %v193_v32, 0.0  ;;  %290 = vrot.lane.b32.xlu2 %v193_v32, %s1840_s29 }
 0x1f4   :  { %199 = vrot.lane.b32.xlu1 %v194_v33, %s1840_s29 }
 0x24c   :  { %v291_v40 = vpop.permute.xlu2 %290 }
 0x24d   :  { %1647 = vmatmul.msk.f32.vlgmr.msrb.gmra.mxu1 %vm132_vm6, %v291_v40 }
 0x266   :  { %v200_v41 = vpop.permute.xlu1 %199 }
 0x267   :  { %1645 = vmatmul.msk.f32.vlgmr.msra.gmra.mxu2 %vm132_vm6, %v200_v41 }
 0x2ca   :  { %v311_v44 = vpop.f32.mrf.mxu1 }
 0x2cb   :  { %v314_v45 = vadd.f32 %v311_v44, %v112_v43 }
 0x2cd   :  { %1709 = vtanh.f32 %v314_v45  ;;  %v1648_v53 = vmul.f32 -1.442695, %v314_v45 }
 0x2d3   :  { %v1710_v46 = vpop.eup %1709 }
 0x2d4   :  { %337 = vrot.lane.b32.xlu2 %v1710_v46, %s1838_s25 }
 0x2ea   :  { %v220_v48 = vpop.f32.mrf.mxu2 }
 0x2eb   :  { %v221_v50 = vadd.f32 %v1999_v47, %v220_v48 }
 0x2ed   :  { %v246_v51 = vadd.f32 %v243_v49, %v221_v50  ;;  %v114_v50 = vpop.f32.mrf.mxu0 }
 0x2ef   :  { %1711 = vtanh.f32 %v246_v51  ;;  %v1646_v7 = vmul.f32 -1.442695, %v246_v51  ;;  %v115_v51 = vadd.f32 %v1932_v5, %v114_v50 }
 0x2f0   :  { %1713 = vpow2.f32 %v1648_v53 }
 0x2f5   :  { %v1712_v52 = vpop.eup %1711 }
 0x2f6   :  { %269 = vrot.lane.b32.xlu0 %v1712_v52, %s1841_s1  ;;  %v1714_v54 = vpop.eup %1713 }
 0x2f7   :  { %v318_v55 = vadd.f32 1.0, %v1714_v54 }
 0x2f9   :  { %1715 = vrcp.f32 %v318_v55  ;;  %v330_v61 = vand.u32 2147483648, %v318_v55  ;;  %vm324_vm8 = vweird.f32 %v318_v55  ;;  %v328_v62 = vand.u32 2147483647, %v318_v55 }
 0x2fa   :  { %1717 = vpow2.f32 %v1646_v7 }
 0x2fb   :  { %v331_v0 = vor.u32 1.1754944e-38, %v330_v61  ;;  %vm329_vm10 = vcmp.eq.f32.partialorder %v328_v62, 8.507059e+37 }
 0x2ff   :  { %v1716_v56 = vpop.eup %1715 }
 0x300   :  { %v320_v57 = vmul.f32 %v1716_v56, %v318_v55  ;;  %vm325_vm7 = vweird.f32 %v1716_v56  ;;  %v1718_v8 = vpop.eup %1717 }
 0x301   :  { %vm326_vm9 = vmor %vm324_vm8, %vm325_vm7  ;;  %v250_v9 = vadd.f32 1.0, %v1718_v8 }
 0x302   :  { %v321_v58 = vsub.f32 1.0, %v320_v57 }
 0x303   :  { %1719 = vrcp.f32 %v250_v9  ;;  %v262_v15 = vand.u32 2147483648, %v250_v9  ;;  %vm256_vm12 = vweird.f32 %v250_v9  ;;  %v260_v16 = vand.u32 2147483647, %v250_v9 }
 0x304   :  { %v322_v59 = vmul.f32 %v1716_v56, %v321_v58 }
 0x305   :  { %v263_v18 = vor.u32 1.1754944e-38, %v262_v15  ;;  %vm261_vm14 = vcmp.eq.f32.partialorder %v260_v16, 8.507059e+37 }
 0x306   :  { %v323_v60 = vadd.f32 %v1716_v56, %v322_v59 }
 0x308   :  { %v327_v63 = vsel %vm326_vm9, %v1716_v56, %v323_v60 }
 0x309   :  { %v332_v4 = vsel %vm329_vm10, %v331_v0, %v327_v63  ;;  %v1720_v10 = vpop.eup %1719 }
 0x30a   :  { %v252_v11 = vmul.f32 %v1720_v10, %v250_v9  ;;  %vm257_vm11 = vweird.f32 %v1720_v10  ;;  %v335_v22 = vmul.f32 %v332_v4, %v1937_v28 }
 0x30b   :  { %vm258_vm13 = vmor %vm256_vm12, %vm257_vm11 }
 0x30c   :  { %v253_v12 = vsub.f32 1.0, %v252_v11 }
 0x30e   :  { %v254_v13 = vmul.f32 %v1720_v10, %v253_v12 }
 0x310   :  { %v255_v14 = vadd.f32 %v1720_v10, %v254_v13 }
 0x312   :  { %v259_v17 = vsel %vm258_vm13, %v1720_v10, %v255_v14 }
 0x313   :  { %v264_v20 = vsel %vm261_vm14, %v263_v18, %v259_v17 }
 0x314   :  { %v267_v26 = vmul.f32 0.0, %v264_v20 }
 0x32e   :  { %v338_v2 = vpop.permute.xlu2 %337 }
 0x32f   :  { %v340_v6 = vmul.f32 %v338_v2, %v332_v4 }
 0x331   :  { %342 = vrot.lane.b32.xlu1 %v340_v6, %s1839_s26 }
 0x368   :  { %v270_v19 = vpop.permute.xlu0 %269 }
 0x369   :  { %v272_v21 = vmul.f32 %v270_v19, %v264_v20 }
 0x36b   :  { %274 = vrot.lane.b32.xlu2 %v272_v21, %s1841_s1 }
 0x3a3   :  { %v343_v23 = vpop.permute.xlu1 %342 }
 0x3a4   :  { %v2006_v24 = vadd.f32 %v343_v23, %v335_v22 }
 0x3a6   :  { %1721 = vtanh.f32 %v2006_v24 }
 0x3ac   :  { %v1722_v25 = vpop.eup %1721 }
 0x3ad   :  { %348 = vrot.lane.b32.xlu0 %v1722_v25, %s1839_s26 }
 0x3c5   :  { %v275_v27 = vpop.permute.xlu2 %274 }
 0x3c6   :  { %v2010_v29 = vadd.f32 %v275_v27, %v267_v26 }
 0x3c8   :  { %1723 = vtanh.f32 %v2010_v29 }
 0x3ce   :  { %v1724_v30 = vpop.eup %1723 }
 0x3cf   :  { %280 = vrot.lane.b32.xlu1 %v1724_v30, %s1841_s1 }
 0x41f   :  { %v349_v31 = vpop.permute.xlu0 %348 }
 0x420   :  { %v351_v32 = vmul.f32 %v349_v31, %v332_v4 }
 0x422   :  { %v352_v28 = vmax.f32 %v351_v32, 0.0  ;;  %497 = vrot.lane.b32.xlu1 %v351_v32, %s1840_s29 }
 0x424   :  { %354 = vrot.lane.b32.xlu2 %v352_v28, %s1840_s29 }
 0x441   :  { %v281_v33 = vpop.permute.xlu1 %280 }
 0x442   :  { %v2016_v40 = vmul.f32 %v281_v33, %v264_v20 }
 0x444   :  { %379 = vrot.lane.b32.xlu0 %v2016_v40, %s1842_s2 }
 0x47e   :  { %v355_v41 = vpop.permute.xlu2 %354 }
 0x47f   :  { %1649 = vmatmul.msk.f32.vlgmr.msrb.gmra.mxu2 %vm132_vm6, %v355_v41  ;;  %v284_v41 = vmax.f32 %v2016_v40, 0.0  ;;  %v285_v40 = vld [vmem:[%s2390_s7] sm:$0xff] }
 0x494   :  { %v498_v44 = vpop.permute.xlu1 %497 }
 0x4b6   :  { %v380_v43 = vpop.permute.xlu0 %379 }
 0x4b7   :  { %1650 = vmatmul.msk.f32.vlgmr.msrb.gmra.mxu3 %vm223_vm15, %v380_v43  ;;  %v286_v43 = vld [vmem:[%s2390_s7 + $0x8] sm:$0xff] }
 0x4bf   :  { %1654 = vmatmul.msk.f32.vlgmr.msra.gmra.mxu3 %vm132_vm6, %v498_v44  ;;  %v445_v44 = vld [vmem:[%s2390_s7 + $0x38] sm:$0xff] }
 0x4c0   :  { %463 = vmatpush.msra.mxu1 %v445_v44 }
 0x502   :  { %v375_v45 = vpop.f32.mrf.mxu2 }
 0x503   :  { %v376_v46 = vadd.f32 %v1999_v47, %v375_v45  ;;  %v444_v45 = vld [vmem:[%s2390_s7 + $0x30] sm:$0xff] }
 0x504   :  { %464 = vmatpush.msra.mxu1 %v444_v45 }
 0x53a   :  { %v400_v48 = vpop.f32.mrf.mxu3 }
 0x53b   :  { %v403_v49 = vadd.f32 %v400_v48, %v376_v46  ;;  %v443_v46 = vld [vmem:[%s2390_s7 + $0x28] sm:$0xff]  ;;  %v442_v48 = vld [vmem:[%s2390_s7 + $0x20] sm:$0xff] }
 0x53c   :  { %465 = vmatpush.msra.mxu1 %v443_v46 }
 0x53d   :  { %1725 = vtanh.f32 %v403_v49  ;;  %v1651_v56 = vmul.f32 -1.442695, %v403_v49 }
 0x53e   :  { %466 = vmatpush.msra.mxu1 %v442_v48 }
 0x540   :  { %579 = vmatpush.msrb.mxu1 %v1955_v35 }
 0x542   :  { %v518_v52 = vpop.f32.mrf.mxu3  ;;  %580 = vmatpush.msrb.mxu1 %v1967_v37 }
 0x543   :  { %v1726_v53 = vpop.eup %1725  ;;  %v521_v54 = vadd.f32 %v518_v52, %v115_v51 }
 0x544   :  { %426 = vrot.lane.b32.xlu2 %v1726_v53, %s1841_s1 }
 0x545   :  { %1727 = vtanh.f32 %v521_v54  ;;  %v1655_v62 = vmul.f32 -1.442695, %v521_v54 }
 0x546   :  { %1729 = vpow2.f32 %v1651_v56 }
 0x54b   :  { %v1728_v55 = vpop.eup %1727 }
 0x54c   :  { %544 = vrot.lane.b32.xlu0 %v1728_v55, %s1838_s25  ;;  %v1730_v57 = vpop.eup %1729 }
 0x54d   :  { %v407_v58 = vadd.f32 1.0, %v1730_v57  ;;  %v54_v57 = vld [vmem:[%s2385_s0 + $0x18] sm:$0xff] }
 0x54e   :  { %1639 = vmatmul.msk.f32.gmra.mxu0 %vm62_vm1, %v54_v57 }
 0x54f   :  { %1731 = vrcp.f32 %v407_v58  ;;  %v419_v2 = vand.u32 2147483648, %v407_v58  ;;  %vm413_vm2 = vweird.f32 %v407_v58  ;;  %v417_v4 = vand.u32 2147483647, %v407_v58 }
 0x550   :  { %1733 = vpow2.f32 %v1655_v62 }
 0x551   :  { %v420_v8 = vor.u32 1.1754944e-38, %v419_v2  ;;  %vm418_vm4 = vcmp.eq.f32.partialorder %v417_v4, 8.507059e+37 }
 0x555   :  { %v1732_v59 = vpop.eup %1731 }
 0x556   :  { %v409_v60 = vmul.f32 %v1732_v59, %v407_v58  ;;  %vm414_vm0 = vweird.f32 %v1732_v59  ;;  %v1734_v6 = vpop.eup %1733 }
 0x557   :  { %vm415_vm3 = vmor %vm413_vm2, %vm414_vm0  ;;  %v525_v9 = vadd.f32 1.0, %v1734_v6 }
 0x558   :  { %v410_v61 = vsub.f32 1.0, %v409_v60 }
 0x559   :  { %1735 = vrcp.f32 %v525_v9  ;;  %v537_v18 = vand.u32 2147483648, %v525_v9  ;;  %vm531_vm7 = vweird.f32 %v525_v9  ;;  %v535_v19 = vand.u32 2147483647, %v525_v9 }
 0x55a   :  { %v411_v63 = vmul.f32 %v1732_v59, %v410_v61 }
 0x55b   :  { %v538_v21 = vor.u32 1.1754944e-38, %v537_v18  ;;  %vm536_vm9 = vcmp.eq.f32.partialorder %v535_v19, 8.507059e+37 }
 0x55c   :  { %v412_v0 = vadd.f32 %v1732_v59, %v411_v63 }
 0x55e   :  { %v416_v7 = vsel %vm415_vm3, %v1732_v59, %v412_v0 }
 0x55f   :  { %v421_v11 = vsel %vm418_vm4, %v420_v8, %v416_v7  ;;  %v1736_v13 = vpop.eup %1735 }
 0x560   :  { %v527_v14 = vmul.f32 %v1736_v13, %v525_v9  ;;  %vm532_vm5 = vweird.f32 %v1736_v13  ;;  %v424_v26 = vmul.f32 %v421_v11, %v2010_v29  ;;  %v288_v29 = vld [vmem:[%s2390_s7 + $0x18] sm:$0xff] }
 0x561   :  { %vm533_vm8 = vmor %vm531_vm7, %vm532_vm5  ;;  %488 = vmatpush.msra.mxu2 %v288_v29 }
 0x562   :  { %v528_v15 = vsub.f32 1.0, %v527_v14 }
 0x564   :  { %v529_v16 = vmul.f32 %v1736_v13, %v528_v15 }
 0x566   :  { %v530_v17 = vadd.f32 %v1736_v13, %v529_v16 }
 0x568   :  { %v534_v20 = vsel %vm533_vm8, %v1736_v13, %v530_v17 }
 0x569   :  { %v539_v23 = vsel %vm536_vm9, %v538_v21, %v534_v20 }
 0x56a   :  { %v542_v31 = vmul.f32 %v539_v23, %v2006_v24  ;;  %v287_v24 = vld [vmem:[%s2390_s7 + $0x10] sm:$0xff] }
 0x56b   :  { %489 = vmatpush.msra.mxu2 %v287_v24 }
 0x56d   :  { %490 = vmatpush.msra.mxu2 %v286_v43 }
 0x56f   :  { %491 = vmatpush.msra.mxu2 %v285_v40 }
 0x571   :  { %602 = vmatpush.msrb.mxu2 %v1950_v34 }
 0x573   :  { %603 = vmatpush.msrb.mxu2 %v1960_v36 }
 0x575   :  { %604 = vmatpush.msrb.mxu2 %v1972_v38 }
 0x577   :  { %605 = vmatpush.msrb.mxu2 %v1982_v39 }
 0x59e   :  { %v427_v10 = vpop.permute.xlu2 %426 }
 0x59f   :  { %v429_v12 = vmul.f32 %v427_v10, %v421_v11 }
 0x5a1   :  { %431 = vrot.lane.b32.xlu1 %v429_v12, %s1841_s1 }
 0x5be   :  { %v545_v22 = vpop.permute.xlu0 %544 }
 0x5bf   :  { %v547_v25 = vmul.f32 %v545_v22, %v539_v23 }
 0x5c1   :  { %549 = vrot.lane.b32.xlu2 %v547_v25, %s1839_s26 }
 0x5cb   :  { %v117_v6 = vpop.f32.mrf.mxu0 }
 0x5cc   :  { %v118_v8 = vadd.f32 %v1932_v5, %v117_v6  ;;  %v650_v6 = vld [vmem:[%s2390_s7 + $0x48] sm:$0xff] }
 0x613   :  { %v432_v27 = vpop.permute.xlu1 %431 }
 0x614   :  { %v2034_v30 = vadd.f32 %v432_v27, %v424_v26 }
 0x616   :  { %1737 = vtanh.f32 %v2034_v30 }
 0x61b   :  { %v550_v32 = vpop.permute.xlu2 %549 }
 0x61c   :  { %v1738_v28 = vpop.eup %1737  ;;  %v2038_v33 = vadd.f32 %v550_v32, %v542_v31 }
 0x61d   :  { %437 = vrot.lane.b32.xlu0 %v1738_v28, %s1841_s1 }
 0x61e   :  { %1739 = vtanh.f32 %v2038_v33 }
 0x624   :  { %v1740_v42 = vpop.eup %1739 }
 0x625   :  { %555 = vrot.lane.b32.xlu1 %v1740_v42, %s1839_s26  ;;  %472 = vrot.lane.b32.xlu0 %v284_v41, %s1842_s2 }
 0x68f   :  { %v438_v49 = vpop.permute.xlu0 %437 }
 0x690   :  { %v440_v50 = vmul.f32 %v438_v49, %v421_v11 }
 0x692   :  { %v441_v51 = vmax.f32 %v440_v50, 0.0 }
 0x694   :  { %447 = vrot.lane.b32.xlu2 %v441_v51, %s1842_s2 }
 0x697   :  { %v473_v52 = vpop.permute.xlu0 %472  ;;  %v556_v53 = vpop.permute.xlu1 %555 }
 0x698   :  { %v558_v54 = vmul.f32 %v556_v53, %v539_v23  ;;  %1653 = vmatmul.msk.f32.vlgmr.msra.gmra.mxu2 %vm223_vm15, %v473_v52 }
 0x699   :  { %762 = vmatpush.msra.mxu2 %v1955_v35 }
 0x69a   :  { %v559_v55 = vmax.f32 %v558_v54, 0.0  ;;  %680 = vrot.lane.b32.xlu0 %v558_v54, %s1840_s29 }
 0x69b   :  { %763 = vmatpush.msra.mxu2 %v1967_v37 }
 0x69c   :  { %586 = vrot.lane.b32.xlu2 %v440_v50, %s1842_s2  ;;  %561 = vrot.lane.b32.xlu1 %v559_v55, %s1840_s29 }
 0x6ee   :  { %v448_v56 = vpop.permute.xlu2 %447 }
 0x6ef   :  { %1652 = vmatmul.msk.f32.vlgmr.msra.gmra.mxu1 %vm223_vm15, %v448_v56 }
 0x6f0   :  { %698 = vmatpush.msra.mxu1 %v1909_v1 }
 0x6f2   :  { %699 = vmatpush.msra.mxu1 %v1918_v3 }
 0x6f6   :  { %v587_v58 = vpop.permute.xlu2 %586 }
 0x6f7   :  { %1657 = vmatmul.msk.f32.vlgmr.msrb.gmra.mxu2 %vm223_vm15, %v587_v58 }
 0x6f8   :  { %881 = vmatpush.msrb.mxu2 %v1909_v1 }
 0x6fa   :  { %882 = vmatpush.msrb.mxu2 %v1918_v3 }
 0x70c   :  { %v681_v60 = vpop.permute.xlu0 %680 }
 0x70e   :  { %v562_v59 = vpop.permute.xlu1 %561 }
 0x70f   :  { %1656 = vmatmul.msk.f32.vlgmr.msrb.gmra.mxu1 %vm132_vm6, %v562_v59 }
 0x717   :  { %1660 = vmatmul.msk.f32.vlgmr.msra.gmra.mxu1 %vm132_vm6, %v681_v60 }
 0x71b   :  { %v493_v61 = vpop.f32.mrf.mxu2 }
 0x76c   :  { %v468_v62 = vpop.f32.mrf.mxu1 }
 0x76d   :  { %v2094_v63 = vadd.f32 %v493_v61, %v468_v62 }
 0x77a   :  { %v607_v4 = vpop.f32.mrf.mxu2 }
 0x78c   :  { %v582_v0 = vpop.f32.mrf.mxu1 }
 0x78d   :  { %v583_v2 = vadd.f32 %v1999_v47, %v582_v0 }
 0x78f   :  { %v610_v7 = vadd.f32 %v607_v4, %v583_v2  ;;  %v651_v4 = vld [vmem:[%s2390_s7 + $0x50] sm:$0xff] }
 0x791   :  { %1741 = vtanh.f32 %v610_v7  ;;  %v1658_v16 = vmul.f32 -1.442695, %v610_v7  ;;  %v649_v7 = vld [vmem:[%s2390_s7 + $0x40] sm:$0xff] }
 0x794   :  { %v701_v9 = vpop.f32.mrf.mxu1 }
 0x795   :  { %v704_v10 = vadd.f32 %v701_v9, %v118_v8  ;;  %v55_v8 = vld [vmem:[%s2385_s0 + $0x20] sm:$0xff] }
 0x796   :  { %1640 = vmatmul.msk.f32.gmra.mxu0 %vm62_vm1, %v55_v8  ;;  %v833_v8 = vld [vmem:[%s2390_s7 + $0x68] sm:$0xff] }
 0x797   :  { %v1742_v11 = vpop.eup %1741  ;;  %1743 = vtanh.f32 %v704_v10  ;;  %v1661_v13 = vmul.f32 -1.442695, %v704_v10 }
 0x798   :  { %633 = vrot.lane.b32.xlu1 %v1742_v11, %s1841_s1 }
 0x799   :  { %1745 = vpow2.f32 %v1661_v13 }
 0x79d   :  { %v1744_v12 = vpop.eup %1743 }
 0x79e   :  { %727 = vrot.lane.b32.xlu2 %v1744_v12, %s1838_s25 }
 0x79f   :  { %v1746_v14 = vpop.eup %1745 }
 0x7a0   :  { %v708_v15 = vadd.f32 1.0, %v1746_v14 }
 0x7a2   :  { %1747 = vrcp.f32 %v708_v15  ;;  %v720_v25 = vand.u32 2147483648, %v708_v15  ;;  %vm714_vm11 = vweird.f32 %v708_v15  ;;  %v718_v26 = vand.u32 2147483647, %v708_v15 }
 0x7a3   :  { %1749 = vpow2.f32 %v1658_v16 }
 0x7a4   :  { %v721_v32 = vor.u32 1.1754944e-38, %v720_v25  ;;  %vm719_vm13 = vcmp.eq.f32.partialorder %v718_v26, 8.507059e+37 }
 0x7a8   :  { %v1748_v17 = vpop.eup %1747 }
 0x7a9   :  { %v710_v18 = vmul.f32 %v1748_v17, %v708_v15  ;;  %v1750_v19 = vpop.eup %1749  ;;  %vm715_vm10 = vweird.f32 %v1748_v17 }
 0x7aa   :  { %v614_v21 = vadd.f32 1.0, %v1750_v19  ;;  %vm716_vm12 = vmor %vm714_vm11, %vm715_vm10 }
 0x7ab   :  { %v711_v20 = vsub.f32 1.0, %v710_v18 }
 0x7ac   :  { %1751 = vrcp.f32 %v614_v21  ;;  %v626_v44 = vand.u32 2147483648, %v614_v21  ;;  %vm620_vm0 = vweird.f32 %v614_v21  ;;  %v624_v45 = vand.u32 2147483647, %v614_v21 }
 0x7ad   :  { %v712_v22 = vmul.f32 %v1748_v17, %v711_v20 }
 0x7ae   :  { %v627_v48 = vor.u32 1.1754944e-38, %v626_v44  ;;  %vm625_vm3 = vcmp.eq.f32.partialorder %v624_v45, 8.507059e+37 }
 0x7af   :  { %v713_v23 = vadd.f32 %v1748_v17, %v712_v22 }
 0x7b1   :  { %v717_v31 = vsel %vm716_vm12, %v1748_v17, %v713_v23 }
 0x7b2   :  { %v1752_v27 = vpop.eup %1751  ;;  %v722_v42 = vsel %vm719_vm13, %v721_v32, %v717_v31 }
 0x7b3   :  { %v616_v28 = vmul.f32 %v1752_v27, %v614_v21  ;;  %vm621_vm14 = vweird.f32 %v1752_v27  ;;  %v725_v52 = vmul.f32 %v722_v42, %v2038_v33 }
 0x7b4   :  { %vm622_vm2 = vmor %vm620_vm0, %vm621_vm14 }
 0x7b5   :  { %v617_v24 = vsub.f32 1.0, %v616_v28 }
 0x7b7   :  { %v618_v43 = vmul.f32 %v1752_v27, %v617_v24 }
 0x7b9   :  { %v619_v40 = vadd.f32 %v1752_v27, %v618_v43 }
 0x7bb   :  { %v623_v46 = vsel %vm622_vm2, %v1752_v27, %v619_v40 }
 0x7bc   :  { %v628_v50 = vsel %vm625_vm3, %v627_v48, %v623_v46 }
 0x7bd   :  { %v631_v56 = vmul.f32 %v628_v50, %v2034_v30  ;;  %v652_v30 = vld [vmem:[%s2390_s7 + $0x58] sm:$0xff] }
 0x7be   :  { %670 = vmatpush.msrb.mxu3 %v652_v30 }
 0x7c0   :  { %671 = vmatpush.msrb.mxu3 %v651_v4 }
 0x7c2   :  { %672 = vmatpush.msrb.mxu3 %v650_v6 }
 0x7c4   :  { %673 = vmatpush.msrb.mxu3 %v649_v7 }
 0x7c6   :  { %785 = vmatpush.msra.mxu3 %v1950_v34 }
 0x7c8   :  { %786 = vmatpush.msra.mxu3 %v1960_v36 }
 0x7ca   :  { %787 = vmatpush.msra.mxu3 %v1972_v38 }
 0x7cc   :  { %788 = vmatpush.msra.mxu3 %v1982_v39 }
 0x7f8   :  { %v728_v41 = vpop.permute.xlu2 %727 }
 0x7f9   :  { %v730_v29 = vmul.f32 %v728_v41, %v722_v42 }
 0x7fb   :  { %732 = vrot.lane.b32.xlu1 %v730_v29, %s1839_s26 }
 0x80a   :  { %v634_v49 = vpop.permute.xlu1 %633 }
 0x80b   :  { %v636_v51 = vmul.f32 %v634_v49, %v628_v50 }
 0x80d   :  { %638 = vrot.lane.b32.xlu0 %v636_v51, %s1841_s1 }
 0x813   :  { %v120_v16 = vpop.f32.mrf.mxu0 }
 0x814   :  { %v121_v17 = vadd.f32 %v1932_v5, %v120_v16 }
 0x86d   :  { %v733_v53 = vpop.permute.xlu1 %732 }
 0x86e   :  { %v2103_v54 = vadd.f32 %v733_v53, %v725_v52 }
 0x870   :  { %1753 = vtanh.f32 %v2103_v54 }
 0x876   :  { %v1754_v55 = vpop.eup %1753 }
 0x877   :  { %738 = vrot.lane.b32.xlu0 %v1754_v55, %s1839_s26 }
 0x87f   :  { %v639_v57 = vpop.permute.xlu0 %638 }
 0x880   :  { %v2108_v58 = vadd.f32 %v639_v57, %v631_v56 }
 0x882   :  { %1755 = vtanh.f32 %v2108_v58 }
 0x888   :  { %v1756_v59 = vpop.eup %1755 }
 0x889   :  { %644 = vrot.lane.b32.xlu2 %v1756_v59, %s1841_s1 }
 0x8e3   :  { %v645_v60 = vpop.permute.xlu2 %644 }
 0x8e4   :  { %v647_v33 = vmul.f32 %v645_v60, %v628_v50 }
 0x8e6   :  { %v648_v61 = vmax.f32 %v647_v33, 0.0  ;;  %769 = vrot.lane.b32.xlu0 %v647_v33, %s1842_s2 }
 0x8e8   :  { %654 = vrot.lane.b32.xlu1 %v648_v61, %s1842_s2 }
 0x8e9   :  { %v739_v62 = vpop.permute.xlu0 %738 }
 0x8ea   :  { %v741_v0 = vmul.f32 %v739_v62, %v722_v42 }
 0x8ec   :  { %v742_v2 = vmax.f32 %v741_v0, 0.0 }
 0x8ee   :  { %744 = vrot.lane.b32.xlu2 %v742_v2, %s1840_s29 }
 0x8f0   :  { %863 = vrot.lane.b32.xlu1 %v741_v0, %s1840_s29 }
 0x948   :  { %v745_v9 = vpop.permute.xlu2 %744 }
 0x949   :  { %1662 = vmatmul.msk.f32.vlgmr.msra.gmra.mxu2 %vm132_vm6, %v745_v9  ;;  %v832_v9 = vld [vmem:[%s2390_s7 + $0x60] sm:$0xff] }
 0x958   :  { %v770_v11 = vpop.permute.xlu0 %769 }
 0x95a   :  { %v655_v10 = vpop.permute.xlu1 %654 }
 0x95b   :  { %1659 = vmatmul.msk.f32.vlgmr.msrb.gmra.mxu3 %vm223_vm15, %v655_v10 }
 0x95c   :  { %945 = vmatpush.msrb.mxu3 %v1955_v35 }
 0x95e   :  { %946 = vmatpush.msrb.mxu3 %v1967_v37 }
 0x962   :  { %v864_v12 = vpop.permute.xlu1 %863 }
 0x963   :  { %1663 = vmatmul.msk.f32.vlgmr.msra.gmra.mxu3 %vm223_vm15, %v770_v11  ;;  %1666 = vmatmul.msk.f32.vlgmr.msrb.gmra.mxu2 %vm132_vm6, %v864_v12 }
 0x964   :  { %1064 = vmatpush.msra.mxu3 %v1909_v1 }
 0x966   :  { %1065 = vmatpush.msra.mxu3 %v1918_v3 }
 0x9cc   :  { %v765_v13 = vpop.f32.mrf.mxu2 }
 0x9cd   :  { %v766_v18 = vadd.f32 %v1999_v47, %v765_v13 }
 0x9de   :  { %v675_v14 = vpop.f32.mrf.mxu3 }
 0x9df   :  { %v2145_v15 = vadd.f32 %v675_v14, %v2094_v63 }
 0x9e6   :  { %v790_v19 = vpop.f32.mrf.mxu3  ;;  %v884_v20 = vpop.f32.mrf.mxu2 }
 0x9e7   :  { %v793_v21 = vadd.f32 %v790_v19, %v766_v18  ;;  %v887_v22 = vadd.f32 %v884_v20, %v121_v17 }
 0x9e9   :  { %1757 = vtanh.f32 %v793_v21  ;;  %v1664_v3 = vmul.f32 -1.442695, %v793_v21  ;;  %v1667_v26 = vmul.f32 -1.442695, %v887_v22 }
 0x9ea   :  { %1759 = vtanh.f32 %v887_v22 }
 0x9eb   :  { %1761 = vpow2.f32 %v1664_v3 }
 0x9ef   :  { %v1758_v23 = vpop.eup %1757 }
 0x9f0   :  { %v1760_v1 = vpop.eup %1759  ;;  %816 = vrot.lane.b32.xlu2 %v1758_v23, %s1841_s1 }
 0x9f1   :  { %910 = vrot.lane.b32.xlu0 %v1760_v1, %s1838_s25  ;;  %v1762_v63 = vpop.eup %1761 }
 0x9f2   :  { %v797_v25 = vadd.f32 1.0, %v1762_v63 }
 0x9f4   :  { %1763 = vrcp.f32 %v797_v25  ;;  %v809_v29 = vand.u32 2147483648, %v797_v25  ;;  %vm803_vm5 = vweird.f32 %v797_v25  ;;  %v807_v24 = vand.u32 2147483647, %v797_v25 }
 0x9f5   :  { %1765 = vpow2.f32 %v1667_v26 }
 0x9f6   :  { %v810_v40 = vor.u32 1.1754944e-38, %v809_v29  ;;  %vm808_vm8 = vcmp.eq.f32.partialorder %v807_v24, 8.507059e+37 }
 0x9fa   :  { %v1764_v5 = vpop.eup %1763 }
 0x9fb   :  { %v799_v27 = vmul.f32 %v1764_v5, %v797_v25  ;;  %v1766_v28 = vpop.eup %1765  ;;  %vm804_vm4 = vweird.f32 %v1764_v5 }
 0x9fc   :  { %v891_v41 = vadd.f32 1.0, %v1766_v28  ;;  %vm805_vm7 = vmor %vm803_vm5, %vm804_vm4 }
 0x9fd   :  { %v800_v31 = vsub.f32 1.0, %v799_v27 }
 0x9fe   :  { %1767 = vrcp.f32 %v891_v41  ;;  %v903_v53 = vand.u32 2147483648, %v891_v41  ;;  %vm897_vm10 = vweird.f32 %v891_v41  ;;  %v901_v55 = vand.u32 2147483647, %v891_v41 }
 0x9ff   :  { %v801_v32 = vmul.f32 %v1764_v5, %v800_v31 }
 0xa00   :  { %v904_v57 = vor.u32 1.1754944e-38, %v903_v53  ;;  %vm902_vm12 = vcmp.eq.f32.partialorder %v901_v55, 8.507059e+37 }
 0xa01   :  { %v802_v42 = vadd.f32 %v1764_v5, %v801_v32 }
 0xa03   :  { %v806_v43 = vsel %vm805_vm7, %v1764_v5, %v802_v42 }
 0xa04   :  { %v811_v45 = vsel %vm808_vm8, %v810_v40, %v806_v43  ;;  %v1768_v48 = vpop.eup %1767 }
 0xa05   :  { %v893_v49 = vmul.f32 %v1768_v48, %v891_v41  ;;  %vm898_vm9 = vweird.f32 %v1768_v48  ;;  %v814_v61 = vmul.f32 %v811_v45, %v2108_v58  ;;  %v834_v58 = vld [vmem:[%s2390_s7 + $0x70] sm:$0xff] }
 0xa06   :  { %vm899_vm11 = vmor %vm897_vm10, %vm898_vm9 }
 0xa07   :  { %v894_v50 = vsub.f32 1.0, %v893_v49 }
 0xa09   :  { %v895_v51 = vmul.f32 %v1768_v48, %v894_v50 }
 0xa0b   :  { %v896_v52 = vadd.f32 %v1768_v48, %v895_v51 }
 0xa0d   :  { %v900_v56 = vsel %vm899_vm11, %v1768_v48, %v896_v52 }
 0xa0e   :  { %v905_v60 = vsel %vm902_vm12, %v904_v57, %v900_v56 }
 0xa0f   :  { %v908_v62 = vmul.f32 %v905_v60, %v2103_v54  ;;  %v835_v54 = vld [vmem:[%s2390_s7 + $0x78] sm:$0xff] }
 0xa10   :  { %853 = vmatpush.msrb.mxu1 %v835_v54 }
 0xa12   :  { %854 = vmatpush.msrb.mxu1 %v834_v58 }
 0xa14   :  { %855 = vmatpush.msrb.mxu1 %v833_v8 }
 0xa16   :  { %856 = vmatpush.msrb.mxu1 %v832_v9 }
 0xa18   :  { %968 = vmatpush.msra.mxu1 %v1950_v34 }
 0xa1a   :  { %969 = vmatpush.msra.mxu1 %v1960_v36  ;;  %v56_v36 = vld [vmem:[%s2385_s0 + $0x28] sm:$0xff] }
 0xa1b   :  { %1641 = vmatmul.msk.f32.gmra.mxu0 %vm62_vm1, %v56_v36  ;;  %v1016_v36 = vld [vmem:[%s2390_s7 + $0x88] sm:$0xff] }
 0xa1c   :  { %970 = vmatpush.msra.mxu1 %v1972_v38 }
 0xa1e   :  { %971 = vmatpush.msra.mxu1 %v1982_v39 }
 0xa4a   :  { %v817_v44 = vpop.permute.xlu2 %816 }
 0xa4b   :  { %v819_v46 = vmul.f32 %v817_v44, %v811_v45 }
 0xa4d   :  { %821 = vrot.lane.b32.xlu1 %v819_v46, %s1841_s1 }
 0xa63   :  { %v911_v59 = vpop.permute.xlu0 %910 }
 0xa64   :  { %v913_v33 = vmul.f32 %v911_v59, %v905_v60 }
 0xa66   :  { %915 = vrot.lane.b32.xlu2 %v913_v33, %s1839_s26 }
 0xa98   :  { %v123_v23 = vpop.f32.mrf.mxu0 }
 0xabf   :  { %v822_v0 = vpop.permute.xlu1 %821 }
 0xac0   :  { %v916_v2 = vpop.permute.xlu2 %915  ;;  %v2155_v30 = vadd.f32 %v822_v0, %v814_v61 }
 0xac1   :  { %v2157_v4 = vadd.f32 %v916_v2, %v908_v62 }
 0xac2   :  { %1769 = vtanh.f32 %v2155_v30 }
 0xac3   :  { %1771 = vtanh.f32 %v2157_v4 }
 0xac8   :  { %v1770_v6 = vpop.eup %1769 }
 0xac9   :  { %v1772_v7 = vpop.eup %1771  ;;  %827 = vrot.lane.b32.xlu0 %v1770_v6, %s1841_s1 }
 0xaca   :  { %921 = vrot.lane.b32.xlu1 %v1772_v7, %s1839_s26 }
 0xb3b   :  { %v828_v10 = vpop.permute.xlu0 %827 }
 0xb3c   :  { %v922_v11 = vpop.permute.xlu1 %921  ;;  %v830_v12 = vmul.f32 %v828_v10, %v811_v45 }
 0xb3d   :  { %v924_v13 = vmul.f32 %v922_v11, %v905_v60 }
 0xb3e   :  { %v831_v14 = vmax.f32 %v830_v12, 0.0  ;;  %952 = vrot.lane.b32.xlu1 %v830_v12, %s1842_s2 }
 0xb3f   :  { %v925_v16 = vmax.f32 %v924_v13, 0.0 }
 0xb40   :  { %837 = vrot.lane.b32.xlu2 %v831_v14, %s1842_s2 }
 0xb41   :  { %927 = vrot.lane.b32.xlu0 %v925_v16, %s1840_s29  ;;  %v1018_v16 = vld [vmem:[%s2390_s7 + $0x98] sm:$0xff] }
 0xb42   :  { %1036 = vmatpush.msra.mxu2 %v1018_v16 }
 0xb48   :  { %1046 = vrot.lane.b32.xlu2 %v924_v13, %s1840_s29 }
 0xb9a   :  { %v838_v34 = vpop.permute.xlu2 %837 }
 0xb9b   :  { %1665 = vmatmul.msk.f32.vlgmr.msrb.gmra.mxu1 %vm223_vm15, %v838_v34  ;;  %v1017_v34 = vld [vmem:[%s2390_s7 + $0x90] sm:$0xff] }
 0xb9c   :  { %1128 = vmatpush.msrb.mxu1 %v1955_v35  ;;  %1037 = vmatpush.msra.mxu2 %v1017_v34 }
 0xb9e   :  { %1129 = vmatpush.msrb.mxu1 %v1967_v37  ;;  %1038 = vmatpush.msra.mxu2 %v1016_v36 }
 0xba2   :  { %v1047_v17 = vpop.permute.xlu2 %1046 }
 0xbb0   :  { %v953_v38 = vpop.permute.xlu1 %952 }
 0xbb1   :  { %1669 = vmatmul.msk.f32.vlgmr.msra.gmra.mxu1 %vm223_vm15, %v953_v38  ;;  %v1015_v38 = vld [vmem:[%s2390_s7 + $0x80] sm:$0xff] }
 0xbb2   :  { %1311 = vmatpush.msra.mxu1 %v1955_v35  ;;  %v2202_v35 = vld [vmem:[%s2386_s3] ss:$0 sm:$0xff]  ;;  %1039 = vmatpush.msra.mxu2 %v1015_v38 }
 0xbb3   :  { %v928_v39 = vpop.permute.xlu0 %927 }
 0xbb4   :  { %1668 = vmatmul.msk.f32.vlgmr.msrb.gmra.mxu3 %vm132_vm6, %v928_v39  ;;  %1312 = vmatpush.msra.mxu1 %v1967_v37  ;;  %v124_v37 = vadd.f32 %v2202_v35, %v123_v23  ;;  %v58_v39 = vld [vmem:[%s2385_s0 + $0x38] sm:$0xff]  ;;  %v1834_v23 = vld [vmem:[%s2388_s4 + $0x8] sm:$0xff] }
 0xbbc   :  { %1672 = vmatmul.msk.f32.vlgmr.msra.gmra.mxu3 %vm132_vm6, %v1047_v17  ;;  %v1830_v17 = vld [vmem:[%s2387_s5 + $0x18] sm:$0xff] }
 0xbbd   :  { %1151 = vmatpush.msrb.mxu2 %v1830_v17 }
 0xc18   :  { %v858_v18 = vpop.f32.mrf.mxu1 }
 0xc19   :  { %v2196_v19 = vadd.f32 %v858_v18, %v2145_v15  ;;  %v1831_v18 = vld [vmem:[%s2387_s5 + $0x10] sm:$0xff] }
 0xc1a   :  { %1152 = vmatpush.msrb.mxu2 %v1831_v18 }
 0xc2e   :  { %v973_v22 = vpop.f32.mrf.mxu1 }
 0xc37   :  { %v948_v20 = vpop.f32.mrf.mxu3 }
 0xc38   :  { %v949_v21 = vadd.f32 %v1999_v47, %v948_v20  ;;  %v1832_v20 = vld [vmem:[%s2387_s5 + $0x8] sm:$0xff] }
 0xc39   :  { %1153 = vmatpush.msrb.mxu2 %v1832_v20 }
 0xc3a   :  { %v976_v1 = vadd.f32 %v973_v22, %v949_v21  ;;  %v1833_v21 = vld [vmem:[%s2387_s5] sm:$0xff] }
 0xc3b   :  { %1154 = vmatpush.msrb.mxu2 %v1833_v21 }
 0xc3c   :  { %1773 = vtanh.f32 %v976_v1  ;;  %v1670_v47 = vmul.f32 -1.442695, %v976_v1  ;;  %v1835_v1 = vld [vmem:[%s2388_s4] sm:$0xff] }
 0xc3f   :  { %v1067_v3 = vpop.f32.mrf.mxu3 }
 0xc40   :  { %v1070_v63 = vadd.f32 %v1067_v3, %v124_v37 }
 0xc42   :  { %v1774_v25 = vpop.eup %1773  ;;  %1775 = vtanh.f32 %v1070_v63  ;;  %v1673_v5 = vmul.f32 -1.442695, %v1070_v63 }
 0xc43   :  { %999 = vrot.lane.b32.xlu0 %v1774_v25, %s1841_s1  ;;  %1777 = vpow2.f32 %v1670_v47 }
 0xc44   :  { %1779 = vpow2.f32 %v1673_v5 }
 0xc48   :  { %v1776_v15 = vpop.eup %1775 }
 0xc49   :  { %1093 = vrot.lane.b32.xlu1 %v1776_v15, %s1838_s25  ;;  %v1778_v26 = vpop.eup %1777 }
 0xc4a   :  { %v980_v27 = vadd.f32 1.0, %v1778_v26  ;;  %v1780_v31 = vpop.eup %1779 }
 0xc4b   :  { %v1074_v32 = vadd.f32 1.0, %v1780_v31 }
 0xc4c   :  { %1781 = vrcp.f32 %v980_v27  ;;  %v992_v45 = vand.u32 2147483648, %v980_v27  ;;  %vm986_vm14 = vweird.f32 %v980_v27  ;;  %v990_v46 = vand.u32 2147483647, %v980_v27 }
 0xc4d   :  { %1783 = vrcp.f32 %v1074_v32  ;;  %v1086_v55 = vand.u32 2147483648, %v1074_v32  ;;  %vm1080_vm4 = vweird.f32 %v1074_v32  ;;  %v1084_v57 = vand.u32 2147483647, %v1074_v32 }
 0xc4e   :  { %v993_v50 = vor.u32 1.1754944e-38, %v992_v45  ;;  %vm991_vm2 = vcmp.eq.f32.partialorder %v990_v46, 8.507059e+37 }
 0xc4f   :  { %v1087_v60 = vor.u32 1.1754944e-38, %v1086_v55  ;;  %vm1085_vm7 = vcmp.eq.f32.partialorder %v1084_v57, 8.507059e+37 }
 0xc52   :  { %v1782_v28 = vpop.eup %1781 }
 0xc53   :  { %v982_v41 = vmul.f32 %v1782_v28, %v980_v27  ;;  %v1784_v42 = vpop.eup %1783  ;;  %vm987_vm13 = vweird.f32 %v1782_v28 }
 0xc54   :  { %v1076_v24 = vmul.f32 %v1784_v42, %v1074_v32  ;;  %vm988_vm0 = vmor %vm986_vm14, %vm987_vm13  ;;  %vm1081_vm3 = vweird.f32 %v1784_v42 }
 0xc55   :  { %v983_v29 = vsub.f32 1.0, %v982_v41  ;;  %vm1082_vm5 = vmor %vm1080_vm4, %vm1081_vm3 }
 0xc56   :  { %v1077_v40 = vsub.f32 1.0, %v1076_v24 }
 0xc57   :  { %v984_v43 = vmul.f32 %v1782_v28, %v983_v29 }
 0xc58   :  { %v1078_v48 = vmul.f32 %v1784_v42, %v1077_v40 }
 0xc59   :  { %v985_v44 = vadd.f32 %v1782_v28, %v984_v43 }
 0xc5a   :  { %v1079_v51 = vadd.f32 %v1784_v42, %v1078_v48 }
 0xc5b   :  { %v989_v49 = vsel %vm988_vm0, %v1782_v28, %v985_v44  ;;  %v2274_v28 = vld [vmem:[%s2389_s6] ss:$0 sm:$0xff] }
 0xc5c   :  { %v994_v53 = vsel %vm991_vm2, %v993_v50, %v989_v49  ;;  %v1083_v59 = vsel %vm1082_vm5, %v1784_v42, %v1079_v51 }
 0xc5d   :  { %v1088_v61 = vsel %vm1085_vm7, %v1087_v60, %v1083_v59  ;;  %v997_v0 = vmul.f32 %v994_v53, %v2155_v30 }
 0xc5e   :  { %v1091_v54 = vmul.f32 %v1088_v61, %v2157_v4  ;;  %v57_v4 = vld [vmem:[%s2385_s0 + $0x30] sm:$0xff] }
 0xc5f   :  { %1642 = vmatmul.msk.f32.gmra.mxu0 %vm62_vm1, %v57_v4 }
 0xc67   :  { %1643 = vmatmul.msk.f32.gmra.mxu0 %vm62_vm1, %v58_v39 }
 0xcb5   :  { %v1000_v52 = vpop.permute.xlu0 %999 }
 0xcb6   :  { %v1002_v56 = vmul.f32 %v1000_v52, %v994_v53 }
 0xcb8   :  { %1004 = vrot.lane.b32.xlu2 %v1002_v56, %s1841_s1 }
 0xcbb   :  { %v1094_v33 = vpop.permute.xlu1 %1093 }
 0xcbc   :  { %v1096_v62 = vmul.f32 %v1094_v33, %v1088_v61 }
 0xcbe   :  { %1098 = vrot.lane.b32.xlu0 %v1096_v62, %s1839_s26 }
 0xcdc   :  { %v126_v25 = vpop.f32.mrf.mxu0 }
 0xcdd   :  { %v127_v47 = vadd.f32 %v2202_v35, %v126_v25 }
 0xce4   :  { %v2265_v15 = vpop.f32.mrf.mxu0 }
 0xd12   :  { %v1005_v2 = vpop.permute.xlu2 %1004 }
 0xd13   :  { %v2210_v6 = vadd.f32 %v1005_v2, %v997_v0 }
 0xd15   :  { %1785 = vtanh.f32 %v2210_v6 }
 0xd1b   :  { %v1786_v7 = vpop.eup %1785 }
 0xd1c   :  { %1010 = vrot.lane.b32.xlu1 %v1786_v7, %s1841_s1 }
 0xd30   :  { %v1099_v58 = vpop.permute.xlu0 %1098 }
 0xd31   :  { %v2215_v8 = vadd.f32 %v1099_v58, %v1091_v54 }
 0xd33   :  { %1787 = vtanh.f32 %v2215_v8 }
 0xd39   :  { %v1788_v9 = vpop.eup %1787 }
 0xd3a   :  { %1104 = vrot.lane.b32.xlu2 %v1788_v9, %s1839_s26 }
 0xd8e   :  { %v1011_v10 = vpop.permute.xlu1 %1010 }
 0xd8f   :  { %v1013_v30 = vmul.f32 %v1011_v10, %v994_v53 }
 0xd91   :  { %v1014_v11 = vmax.f32 %v1013_v30, 0.0  ;;  %1135 = vrot.lane.b32.xlu1 %v1013_v30, %s1842_s2 }
 0xd93   :  { %1020 = vrot.lane.b32.xlu0 %v1014_v11, %s1842_s2 }
 0xd94   :  { %v1105_v12 = vpop.permute.xlu2 %1104 }
 0xd95   :  { %v1107_v13 = vmul.f32 %v1105_v12, %v1088_v61 }
 0xd97   :  { %v1108_v14 = vmax.f32 %v1107_v13, 0.0 }
 0xd99   :  { %1110 = vrot.lane.b32.xlu2 %v1108_v14, %s1840_s29 }
 0xd9b   :  { %1229 = vrot.lane.b32.xlu0 %v1107_v13, %s1840_s29 }
 0xdf3   :  { %v1111_v22 = vpop.permute.xlu2 %1110 }
 0xdf4   :  { %1674 = vmatmul.msk.f32.vlgmr.msrb.gmra.mxu1 %vm132_vm6, %v1111_v22 }
 0xdf5   :  { %1494 = vmatpush.msrb.mxu1 %v1834_v23 }
 0xdf7   :  { %1495 = vmatpush.msrb.mxu1 %v1835_v1 }
 0xe03   :  { %v1136_v3 = vpop.permute.xlu1 %1135 }
 0xe05   :  { %v1021_v37 = vpop.permute.xlu0 %1020 }
 0xe06   :  { %1671 = vmatmul.msk.f32.vlgmr.msra.gmra.mxu2 %vm223_vm15, %v1021_v37  ;;  %v130_v37 = vadd.f32 %v2202_v35, %v2265_v15 }
 0xe07   :  { %1334 = vmatpush.msra.mxu2 %v1830_v17 }
 0xe09   :  { %1335 = vmatpush.msra.mxu2 %v1831_v18 }
 0xe0b   :  { %1336 = vmatpush.msra.mxu2 %v1832_v20 }
 0xe0d   :  { %v1230_v63 = vpop.permute.xlu0 %1229  ;;  %1337 = vmatpush.msra.mxu2 %v1833_v21 }
 0xe0e   :  { %1675 = vmatmul.msk.f32.vlgmr.msrb.gmra.mxu2 %vm223_vm15, %v1136_v3  ;;  %1678 = vmatmul.msk.f32.vlgmr.msrb.gmra.mxu0 %vm132_vm6, %v1230_v63 }
 0xe0f   :  { %1517 = vmatpush.msrb.mxu2 %v1830_v17 }
 0xe11   :  { %1518 = vmatpush.msrb.mxu2 %v1831_v18 }
 0xe13   :  { %1519 = vmatpush.msrb.mxu2 %v1832_v20 }
 0xe15   :  { %1520 = vmatpush.msrb.mxu2 %v1833_v21 }
 0xe71   :  { %v1131_v32 = vpop.f32.mrf.mxu1 }
 0xe72   :  { %v1132_v41 = vadd.f32 %v2274_v28, %v1131_v32 }
 0xe89   :  { %v1041_v5 = vpop.f32.mrf.mxu2 }
 0xe8a   :  { %v2269_v26 = vadd.f32 %v1041_v5, %v2196_v19 }
 0xe8b   :  { %v1250_v27 = vpop.f32.mrf.mxu0 }
 0xe8c   :  { %v1253_v31 = vadd.f32 %v1250_v27, %v127_v47 }
 0xe8e   :  { %1789 = vtanh.f32 %v1253_v31  ;;  %v1679_v19 = vmul.f32 -1.442695, %v1253_v31 }
 0xe91   :  { %v1156_v42 = vpop.f32.mrf.mxu2 }
 0xe92   :  { %v1159_v29 = vadd.f32 %v1156_v42, %v1132_v41 }
 0xe94   :  { %v1790_v24 = vpop.eup %1789  ;;  %1791 = vtanh.f32 %v1159_v29  ;;  %v1676_v48 = vmul.f32 -1.442695, %v1159_v29 }
 0xe95   :  { %1276 = vrot.lane.b32.xlu2 %v1790_v24, %s1838_s25  ;;  %1793 = vpow2.f32 %v1679_v19 }
 0xe9a   :  { %v1792_v43 = vpop.eup %1791 }
 0xe9b   :  { %1182 = vrot.lane.b32.xlu1 %v1792_v43, %s1841_s1  ;;  %v1794_v40 = vpop.eup %1793 }
 0xe9c   :  { %v1257_v44 = vadd.f32 1.0, %v1794_v40 }
 0xe9e   :  { %1795 = vrcp.f32 %v1257_v44  ;;  %v1269_v52 = vand.u32 2147483648, %v1257_v44  ;;  %vm1263_vm8 = vweird.f32 %v1257_v44  ;;  %v1267_v55 = vand.u32 2147483647, %v1257_v44 }
 0xe9f   :  { %1797 = vpow2.f32 %v1676_v48 }
 0xea0   :  { %v1270_v59 = vor.u32 1.1754944e-38, %v1269_v52  ;;  %vm1268_vm10 = vcmp.eq.f32.partialorder %v1267_v55, 8.507059e+37 }
 0xea4   :  { %v1796_v45 = vpop.eup %1795 }
 0xea5   :  { %v1259_v46 = vmul.f32 %v1796_v45, %v1257_v44  ;;  %vm1264_vm1 = vweird.f32 %v1796_v45  ;;  %v1798_v53 = vpop.eup %1797 }
 0xea6   :  { %vm1265_vm9 = vmor %vm1263_vm8, %vm1264_vm1  ;;  %v1163_v57 = vadd.f32 1.0, %v1798_v53 }
 0xea7   :  { %v1260_v49 = vsub.f32 1.0, %v1259_v46 }
 0xea8   :  { %1799 = vrcp.f32 %v1163_v57  ;;  %v1175_v58 = vand.u32 2147483648, %v1163_v57  ;;  %vm1169_vm12 = vweird.f32 %v1163_v57  ;;  %v1173_v9 = vand.u32 2147483647, %v1163_v57 }
 0xea9   :  { %v1261_v50 = vmul.f32 %v1796_v45, %v1260_v49 }
 0xeaa   :  { %v1176_v30 = vor.u32 1.1754944e-38, %v1175_v58  ;;  %vm1174_vm14 = vcmp.eq.f32.partialorder %v1173_v9, 8.507059e+37 }
 0xeab   :  { %v1262_v51 = vadd.f32 %v1796_v45, %v1261_v50 }
 0xead   :  { %v1266_v56 = vsel %vm1265_vm9, %v1796_v45, %v1262_v51 }
 0xeae   :  { %v1271_v33 = vsel %vm1268_vm10, %v1270_v59, %v1266_v56  ;;  %v1800_v62 = vpop.eup %1799 }
 0xeaf   :  { %v1165_v0 = vmul.f32 %v1800_v62, %v1163_v57  ;;  %vm1170_vm11 = vweird.f32 %v1800_v62  ;;  %v1274_v14 = vmul.f32 %v1271_v33, %v2215_v8 }
 0xeb0   :  { %vm1171_vm13 = vmor %vm1169_vm12, %vm1170_vm11 }
 0xeb1   :  { %v1166_v2 = vsub.f32 1.0, %v1165_v0 }
 0xeb3   :  { %v1167_v7 = vmul.f32 %v1800_v62, %v1166_v2 }
 0xeb5   :  { %v1168_v54 = vadd.f32 %v1800_v62, %v1167_v7 }
 0xeb7   :  { %v1172_v10 = vsel %vm1171_vm13, %v1800_v62, %v1168_v54 }
 0xeb8   :  { %v1177_v12 = vsel %vm1174_vm14, %v1176_v30, %v1172_v10 }
 0xeb9   :  { %v1180_v36 = vmul.f32 %v1177_v12, %v2210_v6 }
 0xeef   :  { %v1277_v60 = vpop.permute.xlu2 %1276 }
 0xef0   :  { %v1279_v61 = vmul.f32 %v1277_v60, %v1271_v33 }
 0xef2   :  { %1281 = vrot.lane.b32.xlu1 %v1279_v61, %s1839_s26 }
 0xf0d   :  { %v1183_v11 = vpop.permute.xlu1 %1182 }
 0xf0e   :  { %v1185_v13 = vmul.f32 %v1183_v11, %v1177_v12 }
 0xf10   :  { %1187 = vrot.lane.b32.xlu0 %v1185_v13, %s1841_s1 }
 0xf64   :  { %v1282_v4 = vpop.permute.xlu1 %1281 }
 0xf65   :  { %v2282_v16 = vadd.f32 %v1282_v4, %v1274_v14 }
 0xf67   :  { %1801 = vtanh.f32 %v2282_v16 }
 0xf6d   :  { %v1802_v34 = vpop.eup %1801 }
 0xf6e   :  { %1287 = vrot.lane.b32.xlu0 %v1802_v34, %s1839_s26 }
 0xf82   :  { %v1188_v38 = vpop.permute.xlu0 %1187 }
 0xf83   :  { %v2287_v39 = vadd.f32 %v1188_v38, %v1180_v36 }
 0xf85   :  { %1803 = vtanh.f32 %v2287_v39 }
 0xf8b   :  { %v1804_v17 = vpop.eup %1803 }
 0xf8c   :  { %1193 = vrot.lane.b32.xlu2 %v1804_v17, %s1841_s1 }
 0xfe0   :  { %v1288_v18 = vpop.permute.xlu0 %1287 }
 0xfe1   :  { %v1290_v8 = vmul.f32 %v1288_v18, %v1271_v33 }
 0xfe3   :  { %v1291_v20 = vmax.f32 %v1290_v8, 0.0  ;;  %1412 = vrot.lane.b32.xlu0 %v1290_v8, %s1840_s29 }
 0xfe5   :  { %1293 = vrot.lane.b32.xlu2 %v1291_v20, %s1840_s29 }
 0xfe6   :  { %v1194_v21 = vpop.permute.xlu2 %1193 }
 0xfe7   :  { %v2293_v22 = vmul.f32 %v1194_v21, %v1177_v12 }
 0xfe9   :  { %1318 = vrot.lane.b32.xlu1 %v2293_v22, %s1842_s2 }
0x103f   :  { %v1294_v6 = vpop.permute.xlu2 %1293 }
0x1040   :  { %1680 = vmatmul.msk.f32.vlgmr.msra.gmra.mxu1 %vm132_vm6, %v1294_v6 }
0x1055   :  { %v1413_v23 = vpop.permute.xlu0 %1412 }
0x1056   :  { %1684 = vmatmul.msk.f32.vlgmr.msra.gmra.mxu0 %vm132_vm6, %v1413_v23  ;;  %v1197_v23 = vmax.f32 %v2293_v22, 0.0  ;;  %v1198_v22 = vld [vmem:[%s2390_s7 + $0xa0] sm:$0xff] }
0x105b   :  { %v1319_v1 = vpop.permute.xlu1 %1318 }
0x105c   :  { %1681 = vmatmul.msk.f32.vlgmr.msra.gmra.mxu2 %vm223_vm15, %v1319_v1 }
0x10bd   :  { %v1314_v25 = vpop.f32.mrf.mxu1 }
0x10be   :  { %v1315_v5 = vadd.f32 %v2274_v28, %v1314_v25  ;;  %v1199_v25 = vld [vmem:[%s2390_s7 + $0xa8] sm:$0xff] }
0x10d3   :  { %v1433_v3 = vpop.f32.mrf.mxu0 }
0x10d4   :  { %v1436_v63 = vadd.f32 %v1433_v3, %v130_v37 }
0x10d6   :  { %1805 = vtanh.f32 %v1436_v63  ;;  %v1685_v41 = vmul.f32 -1.442695, %v1436_v63  ;;  %v1201_v63 = vld [vmem:[%s2390_s7 + $0xb8] sm:$0xff] }
0x10d7   :  { %1219 = vmatpush.msrb.mxu3 %v1201_v63 }
0x10dc   :  { %v1806_v47 = vpop.eup %1805 }
0x10dd   :  { %1459 = vrot.lane.b32.xlu2 %v1806_v47, %s1838_s25 }
0x10df   :  { %v1339_v27 = vpop.f32.mrf.mxu2 }
0x10e0   :  { %v1342_v31 = vadd.f32 %v1339_v27, %v1315_v5 }
0x10e2   :  { %1807 = vtanh.f32 %v1342_v31  ;;  %v1682_v19 = vmul.f32 -1.442695, %v1342_v31 }
0x10e3   :  { %1809 = vpow2.f32 %v1685_v41 }
0x10e8   :  { %v1808_v32 = vpop.eup %1807 }
0x10e9   :  { %1365 = vrot.lane.b32.xlu1 %v1808_v32, %s1841_s1  ;;  %v1810_v42 = vpop.eup %1809 }
0x10ea   :  { %v1440_v29 = vadd.f32 1.0, %v1810_v42 }
0x10ec   :  { %1811 = vrcp.f32 %v1440_v29  ;;  %v1452_v44 = vand.u32 2147483648, %v1440_v29  ;;  %vm1446_vm2 = vweird.f32 %v1440_v29  ;;  %v1450_v45 = vand.u32 2147483647, %v1440_v29 }
0x10ed   :  { %1813 = vpow2.f32 %v1682_v19 }
0x10ee   :  { %v1453_v48 = vor.u32 1.1754944e-38, %v1452_v44  ;;  %vm1451_vm4 = vcmp.eq.f32.partialorder %v1450_v45, 8.507059e+37  ;;  %v1384_v44 = vld [vmem:[%s2390_s7 + $0xd8] sm:$0xff]  ;;  %v1383_v45 = vld [vmem:[%s2390_s7 + $0xd0] sm:$0xff] }
0x10f2   :  { %v1812_v35 = vpop.eup %1811 }
0x10f3   :  { %v1442_v15 = vmul.f32 %v1812_v35, %v1440_v29  ;;  %vm1447_vm0 = vweird.f32 %v1812_v35  ;;  %v1814_v51 = vpop.eup %1813 }
0x10f4   :  { %vm1448_vm3 = vmor %vm1446_vm2, %vm1447_vm0  ;;  %v1346_v53 = vadd.f32 1.0, %v1814_v51 }
0x10f5   :  { %v1443_v24 = vsub.f32 1.0, %v1442_v15 }
0x10f6   :  { %1815 = vrcp.f32 %v1346_v53  ;;  %v1358_v33 = vand.u32 2147483648, %v1346_v53  ;;  %vm1352_vm7 = vweird.f32 %v1346_v53  ;;  %v1356_v61 = vand.u32 2147483647, %v1346_v53 }
0x10f7   :  { %v1444_v43 = vmul.f32 %v1812_v35, %v1443_v24 }
0x10f8   :  { %v1359_v0 = vor.u32 1.1754944e-38, %v1358_v33  ;;  %vm1357_vm8 = vcmp.eq.f32.partialorder %v1356_v61, 8.507059e+37  ;;  %v1565_v33 = vld [vmem:[%s2390_s7 + $0xe8] sm:$0xff]  ;;  %v1564_v61 = vld [vmem:[%s2390_s7 + $0xe0] sm:$0xff] }
0x10f9   :  { %v1445_v40 = vadd.f32 %v1812_v35, %v1444_v43 }
0x10fb   :  { %v1449_v46 = vsel %vm1448_vm3, %v1812_v35, %v1445_v40 }
0x10fc   :  { %v1454_v49 = vsel %vm1451_vm4, %v1453_v48, %v1449_v46  ;;  %v1816_v55 = vpop.eup %1815  ;;  %v1382_v46 = vld [vmem:[%s2390_s7 + $0xc8] sm:$0xff]  ;;  %v1381_v48 = vld [vmem:[%s2390_s7 + $0xc0] sm:$0xff] }
0x10fd   :  { %v1348_v56 = vmul.f32 %v1816_v55, %v1346_v53  ;;  %vm1353_vm5 = vweird.f32 %v1816_v55  ;;  %v1457_v58 = vmul.f32 %v1454_v49, %v2282_v16 }
0x10fe   :  { %vm1354_vm1 = vmor %vm1352_vm7, %vm1353_vm5 }
0x10ff   :  { %v1349_v57 = vsub.f32 1.0, %v1348_v56 }
0x1101   :  { %v1350_v59 = vmul.f32 %v1816_v55, %v1349_v57 }
0x1103   :  { %v1351_v60 = vadd.f32 %v1816_v55, %v1350_v59  ;;  %v1567_v59 = vld [vmem:[%s2390_s7 + $0xf8] sm:$0xff] }
0x1105   :  { %v1355_v62 = vsel %vm1354_vm1, %v1816_v55, %v1351_v60  ;;  %v1566_v60 = vld [vmem:[%s2390_s7 + $0xf0] sm:$0xff] }
0x1106   :  { %v1360_v7 = vsel %vm1357_vm8, %v1359_v0, %v1355_v62  ;;  %v1601_v62 = vld [vmem:[%s2392_s9 + $0x8] sm:$0xff] }
0x1107   :  { %v1363_v11 = vmul.f32 %v1360_v7, %v2287_v39  ;;  %1623 = vmatpush.msrb.mxu0 %v1601_v62 }
0x1137   :  { %v1460_v50 = vpop.permute.xlu2 %1459 }
0x1138   :  { %v1462_v52 = vmul.f32 %v1460_v50, %v1454_v49 }
0x113a   :  { %1464 = vrot.lane.b32.xlu1 %v1462_v52, %s1839_s26 }
0x115b   :  { %v1366_v2 = vpop.permute.xlu1 %1365 }
0x115c   :  { %v1368_v54 = vmul.f32 %v1366_v2, %v1360_v7  ;;  %v1600_v2 = vld [vmem:[%s2392_s9] sm:$0xff] }
0x115d   :  { %1624 = vmatpush.msrb.mxu0 %v1600_v2 }
0x115e   :  { %1370 = vrot.lane.b32.xlu0 %v1368_v54, %s1841_s1 }
0x11ac   :  { %v1465_v9 = vpop.permute.xlu1 %1464 }
0x11ad   :  { %v1467_v10 = vadd.f32 %v1465_v9, %v1457_v58 }
0x11af   :  { %1817 = vtanh.f32 %v1467_v10 }
0x11b5   :  { %v1818_v30 = vpop.eup %1817 }
0x11b6   :  { %1470 = vrot.lane.b32.xlu0 %v1818_v30, %s1839_s26  ;;  %v1699_v30 = vld [vmem:[%s2391_s8] ss:$0 sm:$0xff] }
0x11d0   :  { %v1371_v12 = vpop.permute.xlu0 %1370 }
0x11d1   :  { %v2310_v13 = vadd.f32 %v1371_v12, %v1363_v11 }
0x11d3   :  { %1819 = vtanh.f32 %v2310_v13 }
0x11d9   :  { %v1820_v14 = vpop.eup %1819 }
0x11da   :  { %1376 = vrot.lane.b32.xlu2 %v1820_v14, %s1841_s1 }
0x1228   :  { %v1471_v4 = vpop.permute.xlu0 %1470 }
0x1229   :  { %v1473_v34 = vmul.f32 %v1471_v4, %v1454_v49 }
0x122b   :  { %v1474_v36 = vmax.f32 %v1473_v34, 0.0 }
0x122d   :  { %1476 = vrot.lane.b32.xlu2 %v1474_v36, %s1840_s29 }
0x1234   :  { %v1377_v16 = vpop.permute.xlu2 %1376 }
0x1235   :  { %v1379_v38 = vmul.f32 %v1377_v16, %v1360_v7  ;;  %v16_v7 = vstv %s2393_s10 }
0x1236   :  { %17 = vst [vmem:[#allocation2] sm:$0x1] %v16_v7 }
0x1237   :  { %1501 = vrot.lane.b32.xlu1 %v1379_v38, %s1842_s2  ;;  %v1380_v40 = vmax.f32 %v1379_v38, 0.0 }
0x123d   :  { %v1700_v4 = vld [vmem:[#allocation2] ss:$0 sm:$0xff] }
0x1287   :  { %v1477_v17 = vpop.permute.xlu2 %1476 }
0x1288   :  { %1686 = vmatmul.msk.f32.vlgmr.msrb.gmra.mxu1 %vm132_vm6, %v1477_v17 }
0x12a9   :  { %v1502_v39 = vpop.permute.xlu1 %1501 }
0x12aa   :  { %1687 = vmatmul.msk.f32.vlgmr.msrb.gmra.mxu2 %vm223_vm15, %v1502_v39 }
0x1305   :  { %v1497_v18 = vpop.f32.mrf.mxu1 }
0x1306   :  { %v1498_v8 = vadd.f32 %v2274_v28, %v1497_v18  ;;  %v1200_v28 = vld [vmem:[%s2390_s7 + $0xb0] sm:$0xff] }
0x1307   :  { %1220 = vmatpush.msrb.mxu3 %v1200_v28 }
0x1309   :  { %1221 = vmatpush.msrb.mxu3 %v1199_v25 }
0x130b   :  { %1222 = vmatpush.msrb.mxu3 %v1198_v22 }
0x130d   :  { %1402 = vmatpush.msra.mxu3 %v1384_v44 }
0x130f   :  { %1403 = vmatpush.msra.mxu3 %v1383_v45 }
0x1311   :  { %1404 = vmatpush.msra.mxu3 %v1382_v46 }
0x1313   :  { %1405 = vmatpush.msra.mxu3 %v1381_v48 }
0x132d   :  { %v1522_v20 = vpop.f32.mrf.mxu2 }
0x132e   :  { %v1525_v21 = vadd.f32 %v1522_v20, %v1498_v8 }
0x1330   :  { %1821 = vtanh.f32 %v1525_v21  ;;  %v1688_v1 = vmul.f32 -1.442695, %v1525_v21 }
0x1332   :  { %1823 = vpow2.f32 %v1688_v1 }
0x1336   :  { %v1822_v6 = vpop.eup %1821 }
0x1337   :  { %1548 = vrot.lane.b32.xlu0 %v1822_v6, %s1841_s1 }
0x1338   :  { %v1824_v37 = vpop.eup %1823 }
0x1339   :  { %v1529_v3 = vadd.f32 1.0, %v1824_v37 }
0x133b   :  { %1825 = vrcp.f32 %v1529_v3  ;;  %v1541_v41 = vand.u32 2147483648, %v1529_v3  ;;  %vm1535_vm10 = vweird.f32 %v1529_v3  ;;  %v1539_v42 = vand.u32 2147483647, %v1529_v3 }
0x133d   :  { %v1542_v35 = vor.u32 1.1754944e-38, %v1541_v41  ;;  %vm1540_vm12 = vcmp.eq.f32.partialorder %v1539_v42, 8.507059e+37 }
0x133f   :  { %1203 = vrot.lane.b32.xlu0 %v1197_v23, %s1842_s2 }
0x1341   :  { %v1826_v47 = vpop.eup %1825 }
0x1342   :  { %v1531_v5 = vmul.f32 %v1826_v47, %v1529_v3  ;;  %vm1536_vm9 = vweird.f32 %v1826_v47 }
0x1343   :  { %vm1537_vm11 = vmor %vm1535_vm10, %vm1536_vm9 }
0x1344   :  { %v1532_v27 = vsub.f32 1.0, %v1531_v5 }
0x1346   :  { %v1533_v31 = vmul.f32 %v1826_v47, %v1532_v27 }
0x1348   :  { %v1534_v32 = vadd.f32 %v1826_v47, %v1533_v31 }
0x134a   :  { %v1538_v29 = vsel %vm1537_vm11, %v1826_v47, %v1534_v32 }
0x134b   :  { %v1543_v24 = vsel %vm1540_vm12, %v1542_v35, %v1538_v29 }
0x134c   :  { %v1546_v49 = vmul.f32 %v1543_v24, %v2310_v13 }
0x13a9   :  { %v1549_v15 = vpop.permute.xlu0 %1548 }
0x13aa   :  { %v1551_v43 = vmul.f32 %v1549_v15, %v1543_v24 }
0x13ac   :  { %1553 = vrot.lane.b32.xlu1 %v1551_v43, %s1841_s1 }
0x13b1   :  { %v1204_v19 = vpop.permute.xlu0 %1203 }
0x13b2   :  { %1677 = vmatmul.msk.f32.vlgmr.msrb.gmra.mxu3 %vm223_vm15, %v1204_v19 }
0x13b3   :  { %1585 = vmatpush.msrb.mxu3 %v1567_v59 }
0x13b4   :  { %1386 = vrot.lane.b32.xlu1 %v1380_v40, %s1842_s2 }
0x13b5   :  { %1586 = vmatpush.msrb.mxu3 %v1566_v60 }
0x13b7   :  { %1587 = vmatpush.msrb.mxu3 %v1565_v33 }
0x13b9   :  { %1588 = vmatpush.msrb.mxu3 %v1564_v61 }
0x141e   :  { %v1554_v50 = vpop.permute.xlu1 %1553 }
0x141f   :  { %v1556_v51 = vadd.f32 %v1554_v50, %v1546_v49 }
0x1421   :  { %1827 = vtanh.f32 %v1556_v51 }
0x1426   :  { %v1387_v52 = vpop.permute.xlu1 %1386 }
0x1427   :  { %v1828_v53 = vpop.eup %1827  ;;  %1683 = vmatmul.msk.f32.vlgmr.msra.gmra.mxu3 %vm223_vm15, %v1387_v52 }
0x1428   :  { %1559 = vrot.lane.b32.xlu2 %v1828_v53, %s1841_s1 }
0x1435   :  { %v1224_v54 = vpop.f32.mrf.mxu3 }
0x1436   :  { %v1227_v9 = vadd.f32 %v1224_v54, %v2269_v26 }
0x1482   :  { %v1560_v55 = vpop.permute.xlu2 %1559 }
0x1483   :  { %v1562_v56 = vmul.f32 %v1560_v55, %v1543_v24 }
0x1485   :  { %v1563_v57 = vmax.f32 %v1562_v56, 0.0 }
0x1487   :  { %1569 = vrot.lane.b32.xlu2 %v1563_v57, %s1842_s2 }
0x14aa   :  { %v1407_v58 = vpop.f32.mrf.mxu3 }
0x14ab   :  { %v1410_v10 = vadd.f32 %v1407_v58, %v1227_v9 }
0x14e1   :  { %v1570_v0 = vpop.permute.xlu2 %1569 }
0x14e2   :  { %1689 = vmatmul.msk.f32.vlgmr.msrb.gmra.mxu3 %vm223_vm15, %v1570_v0  ;;  %vm1629_vm15 = vcmask 1024  }
0x1565   :  { %v1590_v11 = vpop.f32.mrf.mxu3 }
0x1566   :  { %v1593_v12 = vadd.f32 %v1590_v11, %v1410_v10 }
0x1568   :  { %v1598_v13 = vadd.f32 %v1699_v30, %v1593_v12 }
0x156a   :  { %v1599_v14 = vmax.f32 %v1598_v13, 0.0 }
0x156c   :  { %1690 = vmatmul.msk.f32.vlgmr.msrb.gmra.mxu0 %vm132_vm6, %v1599_v14 }
0x15e9   :  { %v1626_v34 = vpop.f32.mrf.mxu0 }
0x15ea   :  { %v1627_v36 = vadd.f32 %v1700_v4, %v1626_v34 }
0x15ec   :  { %1630 = vst.msk [vmem:[%s2394_s11] sm:$0x3] %vm1629_vm15, %v1627_v36 }

</bundles_post_ra>
